<compile_context>
chip_gen: v7x
topology: tpu7x:2x2x1
jax: 0.10.0
libtpu: 0.0.40
codegen_flags: <defaults>
</compile_context>

<pallas_src>
import functools

import jax
import jax.numpy as jnp
from jax import lax
from jax.experimental import pallas as pl
from jax.experimental.pallas import tpu as pltpu


def _round_up(x, m):
    return ((x + m - 1) // m) * m


def _layer_norm(z, gamma, beta, eps, d):
    mu = jnp.mean(z, axis=-1, keepdims=True)
    var = jnp.sum((z - mu) ** 2, axis=-1, keepdims=True) * (1.0 / (d - 1))  # unbiased
    inv_sigma = pl.reciprocal(jnp.sqrt(var) + eps, approx=True)             # EUP slot
    return (z - mu) * inv_sigma * gamma + beta


def encoder_layer_kernel(
    xq_ref,                   # (1, TILE_L, D)   query / residual tile   (f32)
    xkv_ref,                  # (1, L, D)        full sequence for K/V   (f32)
    wq_ref, wk_ref, wv_ref,   # (D, H*pad_k) x2, (D, H*pad_v)            (bf16, head-major, lane-padded)
    pw_ref, pb_ref,           # (H*pad_v, D) bf16, (1, D) f32
    ln1_g_ref, ln1_b_ref,     # (1, D), (1, D)                            (f32)
    w1_ref, b1_ref,           # (D, d_inner) bf16, (1, d_inner) f32
    w2_ref, b2_ref,           # (d_inner, D) bf16, (1, D) f32
    ln2_g_ref, ln2_b_ref,     # (1, D), (1, D)                            (f32)
    out_ref,                  # (1, TILE_L, D)                            (f32)
    *rest,                    # [attn_ref (H,1,TILE_L,L) f32]? + scratch refs
    n_head, pad_k, pad_v, inv_temper, eps, emit_attn,
):
    if emit_attn:
        attn_ref = rest[0]
        q_scr, k_scr, v_scr, head_acc = rest[1:]
    else:
        attn_ref = None
        q_scr, k_scr, v_scr, head_acc = rest

    xq = xq_ref[0]                                   # (TILE_L, D) f32
    d_model = xq.shape[-1]
    bf16 = jnp.bfloat16

    # ---- K/V projections hoisted out of the query-tile (qi) axis. ----
    # qi is "arbitrary" (serial per core), so this scratch persists and is reused
    # across all query tiles of the current batch element.
    @pl.when(pl.program_id(1) == 0)
    def _():
        xkv = xkv_ref[0].astype(bf16)                # (L, D)
        k_scr[...] = jnp.dot(xkv, wk_ref[...], preferred_element_type=jnp.float32)
        v_scr[...] = jnp.dot(xkv, wv_ref[...], preferred_element_type=jnp.float32)

    # Fused Q projection for this tile; 1/temper folded into q (scales (TILE_L, H*pad_k)
    # instead of the (TILE_L, L) scores).
    q_scr[...] = jnp.dot(xq.astype(bf16), wq_ref[...],
                         preferred_element_type=jnp.float32) * inv_temper

    # ---------------- multi-head scaled dot-product attention ----------------
    # Static loop over heads; all slices / stores are at 128-lane-aligned offsets
    # (pad_k / pad_v are multiples of 128), so they are full-vreg accesses.
    for h in range(n_head):
        sk = slice(h * pad_k, (h + 1) * pad_k)
        sv = slice(h * pad_v, (h + 1) * pad_v)
        q_h = q_scr[:, sk].astype(bf16)              # (TILE_L, pad_k)
        k_h = k_scr[:, sk].astype(bf16)              # (L, pad_k)
        v_h = v_scr[:, sv].astype(bf16)              # (L, pad_v)

        # Contract the head dim of both operands (no explicit transpose / XLU work).
        s = lax.dot_general(q_h, k_h, (((1,), (1,)), ((), ())),
                            preferred_element_type=jnp.float32)     # (TILE_L, L)
        s = s - jnp.max(s, axis=-1, keepdims=True)
        e = jnp.exp(s)
        p = e * pl.reciprocal(jnp.sum(e, axis=-1, keepdims=True), approx=True)
        if emit_attn:
            attn_ref[h, 0, :, :] = p
        # Head-major, lane-aligned store: replaces concat (no relayout, no masked vst).
        head_acc[:, sv] = jnp.dot(p.astype(bf16), v_h,
                                  preferred_element_type=jnp.float32)

    proj = jnp.dot(head_acc[...].astype(bf16), pw_ref[...],
                   preferred_element_type=jnp.float32) + pb_ref[...]
    # dropout == identity (eval)
    ln1 = _layer_norm(proj + xq, ln1_g_ref[...], ln1_b_ref[...], eps, d_model)

    # ---------------- position-wise feed forward ----------------
    h1 = jnp.dot(ln1.astype(bf16), w1_ref[...],
                 preferred_element_type=jnp.float32) + b1_ref[...]
    h1 = jnp.maximum(h1, 0.0)
    o = jnp.dot(h1.astype(bf16), w2_ref[...],
                preferred_element_type=jnp.float32) + b2_ref[...]
    out_ref[0] = _layer_norm(o + ln1, ln2_g_ref[...], ln2_b_ref[...], eps, d_model)


def encoder_layer(enc_input, params, *, n_head, d_k, d_v, d_inner,
                  eps=1e-3, return_attn=True):
    B, L, D = enc_input.shape
    inv_temper = 1.0 / (float(D) ** 0.5)
    pad_k = _round_up(d_k, 128)       # per-head lane stride, multiple of 128
    pad_v = _round_up(d_v, 128)

    # ---- VMEM budget clamped to the actual device (v7x = 64 MiB per TensorCore). ----
    try:
        device_vmem = int(pltpu.get_tpu_info().vmem_capacity_bytes)
    except Exception:
        device_vmem = 64 << 20                       # conservative (v7x per-TC)
    vmem_cap = device_vmem - (8 << 20)               # headroom for Mosaic temporaries

    def est_bytes(tile):
        est = 2 * tile * D * 4                       # xq tile (double-buffered)
        est += 2 * L * D * 4                         # full-seq x block
        est += 2 * tile * D * 4                      # out block
        if return_attn:
            est += 2 * n_head * tile * L * 4         # attention-prob block
        # grid-invariant bf16 weights, single-buffered (Buffered(1))
        est += (2 * D * n_head * pad_k + D * n_head * pad_v
                + n_head * pad_v * D + D * d_inner + d_inner * D) * 2
        est += (6 * D + d_inner) * 4                 # biases + LN params (f32)
        # f32 scratch (q, K, V, head concat)
        est += (tile * n_head * pad_k + L * n_head * pad_k
                + L * n_head * pad_v + tile * n_head * pad_v) * 4
        return est

    # Query tile: largest 128-multiple divisor of L whose working set fits the budget.
    divisors = [c for c in (512, 256, 128) if L % c == 0]
    tile_l = None
    for c in divisors:
        if est_bytes(c) <= 0.7 * vmem_cap:
            tile_l = c
            break
    if tile_l is None:
        # TODO(synk): for very long L (where even TILE_L=128 + attn output overflows
        # VMEM) switch to flash-style inner-KV tiling and/or return_attn=False.
        tile_l = divisors[-1] if divisors else L
    n_qblk = L // tile_l

    vmem_limit = int(max(16 << 20, min(vmem_cap, 2 * est_bytes(tile_l))))

    # ---- head-major, 128-lane-padded fused projection weights (bf16 in HBM). ----
    def pad_heads(w, pad):                           # (H, D, d) -> (D, H*pad)
        H_, D_, d_ = w.shape
        if d_ != pad:
            w = jnp.pad(w, ((0, 0), (0, 0), (0, pad - d_)))
        return jnp.transpose(w, (1, 0, 2)).reshape(D_, H_ * pad).astype(jnp.bfloat16)

    wq_f = pad_heads(params["w_qs"], pad_k)
    wk_f = pad_heads(params["w_ks"], pad_k)
    wv_f = pad_heads(params["w_vs"], pad_v)

    pw = params["proj_w"].reshape(n_head, d_v, D)
    if d_v != pad_v:
        pw = jnp.pad(pw, ((0, 0), (0, pad_v - d_v), (0, 0)))   # zero rows at padding
    pw = pw.reshape(n_head * pad_v, D).astype(jnp.bfloat16)

    w1 = params["w1"].astype(jnp.bfloat16)
    w2 = params["w2"].astype(jnp.bfloat16)

    kernel = functools.partial(
        encoder_layer_kernel,
        n_head=n_head, pad_k=pad_k, pad_v=pad_v,
        inv_temper=inv_temper, eps=eps, emit_attn=return_attn,
    )

    # Grid-invariant blocks: single-buffered (halves weight-resident VMEM on v7x).
    def const_spec(shape):
        nd = len(shape)
        return pl.BlockSpec(shape, lambda b, qi, _nd=nd: (0,) * _nd,
                            pipeline_mode=pl.Buffered(1))

    in_specs = [
        pl.BlockSpec((1, tile_l, D), lambda b, qi: (b, qi, 0)),   # x (query tile)
        pl.BlockSpec((1, L, D), lambda b, qi: (b, 0, 0)),         # x (full seq, K/V)
        const_spec((D, n_head * pad_k)),                          # fused Wq
        const_spec((D, n_head * pad_k)),                          # fused Wk
        const_spec((D, n_head * pad_v)),                          # fused Wv
        const_spec((n_head * pad_v, D)), const_spec((1, D)),      # proj w / b
        const_spec((1, D)), const_spec((1, D)),                   # ln1 gamma / beta
        const_spec((D, d_inner)), const_spec((1, d_inner)),       # ffn w1 / b1
        const_spec((d_inner, D)), const_spec((1, D)),             # ffn w2 / b2
        const_spec((1, D)), const_spec((1, D)),                   # ln2 gamma / beta
    ]

    out_specs = [pl.BlockSpec((1, tile_l, D), lambda b, qi: (b, qi, 0))]
    out_shape = [jax.ShapeDtypeStruct((B, L, D), jnp.float32)]
    if return_attn:
        out_specs.append(
            pl.BlockSpec((n_head, 1, tile_l, L), lambda b, qi: (0, b, qi, 0)))
        out_shape.append(jax.ShapeDtypeStruct((n_head, B, L, L), jnp.float32))

    scratch_shapes = [
        pltpu.VMEM((tile_l, n_head * pad_k), jnp.float32),   # q (temper folded in)
        pltpu.VMEM((L, n_head * pad_k), jnp.float32),        # K (hoisted, reused over qi)
        pltpu.VMEM((L, n_head * pad_v), jnp.float32),        # V (hoisted, reused over qi)
        pltpu.VMEM((tile_l, n_head * pad_v), jnp.float32),   # head-major attn@V concat
    ]

    outs = pl.pallas_call(
        kernel,
        grid=(B, n_qblk),
        in_specs=in_specs,
        out_specs=tuple(out_specs),
        out_shape=tuple(out_shape),
        scratch_shapes=scratch_shapes,
        compiler_params=pltpu.CompilerParams(
            # qi serial ("arbitrary") so hoisted K/V scratch is valid across query
            # tiles; b "parallel" so v7x megacore shards the batch dimension.
            dimension_semantics=("parallel", "arbitrary"),
            vmem_limit_bytes=vmem_limit,
        ),
    )(
        enc_input, enc_input,
        wq_f, wk_f, wv_f,
        pw, params["proj_b"],
        params["ln1_g"], params["ln1_b"],
        w1, params["b1"], w2, params["b2"],
        params["ln2_g"], params["ln2_b"],
    )

    if return_attn:
        out, attns = outs
        # PyTorch returns attns with leading dim (n_head * mb_size): index = h*B + b.
        return out, attns.reshape(n_head * B, L, L)
    return outs[0], None


def reference(enc_input, params, *, n_head, d_k, d_v, eps=1e-3):
    """Pure-JAX (f32) mirror of the PyTorch forward, for a correctness check."""
    B, L, D = enc_input.shape
    temper = float(D) ** 0.5
    q = jnp.einsum("bld,hdk->hblk", enc_input, params["w_qs"])
    k = jnp.einsum("bld,hdk->hblk", enc_input, params["w_ks"])
    v = jnp.einsum("bld,hdv->hblv", enc_input, params["w_vs"])
    s = jnp.einsum("hbqk,hbmk->hbqm", q, k) / temper
    attn = jax.nn.softmax(s, axis=-1)                          # (H, B, L, L)
    out = jnp.einsum("hbqm,hbmv->hbqv", attn, v)               # (H, B, L, dv)
    concat = jnp.transpose(out, (1, 2, 0, 3)).reshape(B, L, n_head * d_v)
    proj = concat @ params["proj_w"] + params["proj_b"]

    def ln(z, g, b):
        mu = jnp.mean(z, -1, keepdims=True)
        var = jnp.sum((z - mu) ** 2, -1, keepdims=True) / (D - 1)
        return (z - mu) / (jnp.sqrt(var) + eps) * g + b

    ln1 = ln(proj + enc_input, params["ln1_g"], params["ln1_b"])
    h1 = jax.nn.relu(ln1 @ params["w1"] + params["b1"])
    o = h1 @ params["w2"] + params["b2"]
    ln2 = ln(o + ln1, params["ln2_g"], params["ln2_b"])
    return ln2, attn.reshape(n_head * B, L, L)


if __name__ == "__main__":
    B, L = 2, 8
    d_model, d_inner = 32, 64
    n_head, d_k, d_v = 4, 8, 8

    key = jax.random.PRNGKey(0)
    ks = jax.random.split(key, 10)

    params = {
        "w_qs": jax.random.normal(ks[0], (n_head, d_model, d_k), jnp.float32)
        * (2.0 / (d_model + d_k)) ** 0.5,
        "w_ks": jax.random.normal(ks[1], (n_head, d_model, d_k), jnp.float32)
        * (2.0 / (d_model + d_k)) ** 0.5,
        "w_vs": jax.random.normal(ks[2], (n_head, d_model, d_v), jnp.float32)
        * (2.0 / (d_model + d_v)) ** 0.5,
        # stored as (in=H*dv, out=d_model): kernel does concat @ proj_w + proj_b
        "proj_w": jax.random.normal(ks[3], (n_head * d_v, d_model), jnp.float32)
        * (1.0 / (n_head * d_v)) ** 0.5,
        "proj_b": jnp.zeros((1, d_model), jnp.float32),
        "ln1_g": jnp.ones((1, d_model), jnp.float32),
        "ln1_b": jnp.zeros((1, d_model), jnp.float32),
        # Conv1d(d_model -> d_inner, k=1) as (D, d_inner); Conv1d(d_inner -> d_model) as (d_inner, D)
        "w1": jax.random.normal(ks[4], (d_model, d_inner), jnp.float32)
        * (1.0 / d_model) ** 0.5,
        "b1": jax.random.normal(ks[5], (1, d_inner), jnp.float32) * 0.01,
        "w2": jax.random.normal(ks[6], (d_inner, d_model), jnp.float32)
        * (1.0 / d_inner) ** 0.5,
        "b2": jax.random.normal(ks[7], (1, d_model), jnp.float32) * 0.01,
        "ln2_g": jnp.ones((1, d_model), jnp.float32),
        "ln2_b": jnp.zeros((1, d_model), jnp.float32),
    }

    enc_input = jax.random.normal(ks[8], (B, L, d_model), jnp.float32)

    enc_out, enc_attn = encoder_layer(
        enc_input, params, n_head=n_head, d_k=d_k, d_v=d_v, d_inner=d_inner
    )
    jax.block_until_ready((enc_out, enc_attn))

    ref_out, ref_attn = reference(enc_input, params, n_head=n_head, d_k=d_k, d_v=d_v)
    assert enc_out.shape == (B, L, d_model)
    assert enc_attn.shape == (n_head * B, L, L)
    # Tolerances relaxed vs. the pure-f32 reference: matmul operands run in bf16 on the
    # MXU (f32 accumulation) and softmax/LN reciprocals use the approximate EUP path.
    assert jnp.allclose(enc_out, ref_out, atol=1e-1, rtol=1e-1)
    assert jnp.allclose(enc_attn, ref_attn, atol=5e-2, rtol=5e-2)

    print("KERNEL_OK")
</pallas_src>

<mosaic_0001>
module attributes {stable_mosaic.version = 11 : i64} {
  func.func @encoder_layer_kernel(%arg0: i32, %arg1: i32, %arg2: memref<1x8x32xf32, #tpu.memory_space<vmem>>, %arg3: memref<1x8x32xf32, #tpu.memory_space<vmem>>, %arg4: memref<32x512xbf16, #tpu.memory_space<vmem>>, %arg5: memref<32x512xbf16, #tpu.memory_space<vmem>>, %arg6: memref<32x512xbf16, #tpu.memory_space<vmem>>, %arg7: memref<512x32xbf16, #tpu.memory_space<vmem>>, %arg8: memref<1x32xf32, #tpu.memory_space<vmem>>, %arg9: memref<1x32xf32, #tpu.memory_space<vmem>>, %arg10: memref<1x32xf32, #tpu.memory_space<vmem>>, %arg11: memref<32x64xbf16, #tpu.memory_space<vmem>>, %arg12: memref<1x64xf32, #tpu.memory_space<vmem>>, %arg13: memref<64x32xbf16, #tpu.memory_space<vmem>>, %arg14: memref<1x32xf32, #tpu.memory_space<vmem>>, %arg15: memref<1x32xf32, #tpu.memory_space<vmem>>, %arg16: memref<1x32xf32, #tpu.memory_space<vmem>>, %arg17: memref<1x8x32xf32, #tpu.memory_space<vmem>>, %arg18: memref<4x1x8x8xf32, #tpu.memory_space<vmem>>, %arg19: memref<8x512xf32, #tpu.memory_space<vmem>>, %arg20: memref<8x512xf32, #tpu.memory_space<vmem>>, %arg21: memref<8x512xf32, #tpu.memory_space<vmem>>, %arg22: memref<8x512xf32, #tpu.memory_space<vmem>>) attributes {dimension_semantics = [#tpu.dimension_semantics<parallel>, #tpu.dimension_semantics<arbitrary>], iteration_bounds = array<i64: 2, 1>, scalar_prefetch = 0 : i64, scratch_operands = 4 : i64, tpu.core_type = #tpu.core_type<tc>, window_params = [{transform_indices = @transform_0, window_bounds = array<i64: 1, 8, 32>}, {transform_indices = @transform_1, window_bounds = array<i64: 1, 8, 32>}, {pipeline_mode = #tpu.pipeline_mode<synchronous>, transform_indices = @transform_2, window_bounds = array<i64: 32, 512>}, {pipeline_mode = #tpu.pipeline_mode<synchronous>, transform_indices = @transform_3, window_bounds = array<i64: 32, 512>}, {pipeline_mode = #tpu.pipeline_mode<synchronous>, transform_indices = @transform_4, window_bounds = array<i64: 32, 512>}, {pipeline_mode = #tpu.pipeline_mode<synchronous>, transform_indices = @transform_5, window_bounds = array<i64: 512, 32>}, {pipeline_mode = #tpu.pipeline_mode<synchronous>, transform_indices = @transform_6, window_bounds = array<i64: 1, 32>}, {pipeline_mode = #tpu.pipeline_mode<synchronous>, transform_indices = @transform_7, window_bounds = array<i64: 1, 32>}, {pipeline_mode = #tpu.pipeline_mode<synchronous>, transform_indices = @transform_8, window_bounds = array<i64: 1, 32>}, {pipeline_mode = #tpu.pipeline_mode<synchronous>, transform_indices = @transform_9, window_bounds = array<i64: 32, 64>}, {pipeline_mode = #tpu.pipeline_mode<synchronous>, transform_indices = @transform_10, window_bounds = array<i64: 1, 64>}, {pipeline_mode = #tpu.pipeline_mode<synchronous>, transform_indices = @transform_11, window_bounds = array<i64: 64, 32>}, {pipeline_mode = #tpu.pipeline_mode<synchronous>, transform_indices = @transform_12, window_bounds = array<i64: 1, 32>}, {pipeline_mode = #tpu.pipeline_mode<synchronous>, transform_indices = @transform_13, window_bounds = array<i64: 1, 32>}, {pipeline_mode = #tpu.pipeline_mode<synchronous>, transform_indices = @transform_14, window_bounds = array<i64: 1, 32>}, {transform_indices = @transform_15, window_bounds = array<i64: 1, 8, 32>}, {transform_indices = @transform_16, window_bounds = array<i64: 4, 1, 8, 8>}]} {
    %c0 = arith.constant 0 : index
    %c0_0 = arith.constant 0 : index
    %c0_1 = arith.constant 0 : index
    %0 = vector.load %arg2[%c0, %c0_0, %c0_1] : memref<1x8x32xf32, #tpu.memory_space<vmem>>, vector<1x8x32xf32>
    %1 = vector.shape_cast %0 : vector<1x8x32xf32> to vector<8x32xf32>
    %c0_i32 = arith.constant 0 : i32
    %2 = arith.cmpi eq, %arg1, %c0_i32 : i32
    %3 = arith.extui %2 : i1 to i32
    %c0_i32_2 = arith.constant 0 : i32
    %4 = arith.cmpi ne, %3, %c0_i32_2 : i32
    scf.if %4 {
      %c0_105 = arith.constant 0 : index
      %c0_106 = arith.constant 0 : index
      %c0_107 = arith.constant 0 : index
      %179 = vector.load %arg3[%c0_105, %c0_106, %c0_107] : memref<1x8x32xf32, #tpu.memory_space<vmem>>, vector<1x8x32xf32>
      %180 = vector.shape_cast %179 : vector<1x8x32xf32> to vector<8x32xf32>
      %181 = arith.truncf %180 : vector<8x32xf32> to vector<8x32xbf16>
      %c0_108 = arith.constant 0 : index
      %c0_109 = arith.constant 0 : index
      %182 = vector.load %arg5[%c0_108, %c0_109] : memref<32x512xbf16, #tpu.memory_space<vmem>>, vector<32x512xbf16>
      %cst_110 = arith.constant dense<0.000000e+00> : vector<8x512xf32>
      %183 = tpu.matmul %181, %182, %cst_110 {dimension_numbers = #tpu.dot_dimension_numbers<[1], [0], [0], [1], [0, 0, 1, 1], [], []>} : vector<8x32xbf16>, vector<32x512xbf16>, vector<8x512xf32> -> vector<8x512xf32>
      %c0_111 = arith.constant 0 : index
      %c0_112 = arith.constant 0 : index
      %184 = vector.load %arg20[%c0_111, %c0_112] : memref<8x512xf32, #tpu.memory_space<vmem>>, vector<8x512xf32>
      tpu.vector_store %arg20[%c0_111, %c0_112], %183 {strides = array<i32>} : memref<8x512xf32, #tpu.memory_space<vmem>>, vector<8x512xf32>,
      %c0_113 = arith.constant 0 : index
      %c0_114 = arith.constant 0 : index
      %185 = vector.load %arg6[%c0_113, %c0_114] : memref<32x512xbf16, #tpu.memory_space<vmem>>, vector<32x512xbf16>
      %cst_115 = arith.constant dense<0.000000e+00> : vector<8x512xf32>
      %186 = tpu.matmul %181, %185, %cst_115 {dimension_numbers = #tpu.dot_dimension_numbers<[1], [0], [0], [1], [0, 0, 1, 1], [], []>} : vector<8x32xbf16>, vector<32x512xbf16>, vector<8x512xf32> -> vector<8x512xf32>
      %c0_116 = arith.constant 0 : index
      %c0_117 = arith.constant 0 : index
      %187 = vector.load %arg21[%c0_116, %c0_117] : memref<8x512xf32, #tpu.memory_space<vmem>>, vector<8x512xf32>
      tpu.vector_store %arg21[%c0_116, %c0_117], %186 {strides = array<i32>} : memref<8x512xf32, #tpu.memory_space<vmem>>, vector<8x512xf32>,
    } else {
    }
    %5 = arith.truncf %1 : vector<8x32xf32> to vector<8x32xbf16>
    %c0_3 = arith.constant 0 : index
    %c0_4 = arith.constant 0 : index
    %6 = vector.load %arg4[%c0_3, %c0_4] : memref<32x512xbf16, #tpu.memory_space<vmem>>, vector<32x512xbf16>
    %cst = arith.constant dense<0.000000e+00> : vector<8x512xf32>
    %7 = tpu.matmul %5, %6, %cst {dimension_numbers = #tpu.dot_dimension_numbers<[1], [0], [0], [1], [0, 0, 1, 1], [], []>} : vector<8x32xbf16>, vector<32x512xbf16>, vector<8x512xf32> -> vector<8x512xf32>
    %cst_5 = arith.constant 0.176776692 : f32
    %8 = vector.broadcast %cst_5 : f32 to vector<8x512xf32>
    %9 = arith.mulf %7, %8 : vector<8x512xf32>
    %c0_6 = arith.constant 0 : index
    %c0_7 = arith.constant 0 : index
    %10 = vector.load %arg19[%c0_6, %c0_7] : memref<8x512xf32, #tpu.memory_space<vmem>>, vector<8x512xf32>
    tpu.vector_store %arg19[%c0_6, %c0_7], %9 {strides = array<i32>} : memref<8x512xf32, #tpu.memory_space<vmem>>, vector<8x512xf32>,
    %c0_8 = arith.constant 0 : index
    %c0_9 = arith.constant 0 : index
    %11 = vector.load %arg19[%c0_8, %c0_9] : memref<8x512xf32, #tpu.memory_space<vmem>>, vector<8x128xf32>
    %12 = arith.truncf %11 : vector<8x128xf32> to vector<8x128xbf16>
    %c0_10 = arith.constant 0 : index
    %c0_11 = arith.constant 0 : index
    %13 = vector.load %arg20[%c0_10, %c0_11] : memref<8x512xf32, #tpu.memory_space<vmem>>, vector<8x128xf32>
    %14 = arith.truncf %13 : vector<8x128xf32> to vector<8x128xbf16>
    %c0_12 = arith.constant 0 : index
    %c0_13 = arith.constant 0 : index
    %15 = vector.load %arg21[%c0_12, %c0_13] : memref<8x512xf32, #tpu.memory_space<vmem>>, vector<8x128xf32>
    %16 = arith.truncf %15 : vector<8x128xf32> to vector<8x128xbf16>
    %cst_14 = arith.constant dense<0.000000e+00> : vector<8x8xf32>
    %17 = tpu.matmul %12, %14, %cst_14 {dimension_numbers = #tpu.dot_dimension_numbers<[1], [1], [0], [0], [0, 0, 1, 0], [], []>} : vector<8x128xbf16>, vector<8x128xbf16>, vector<8x8xf32> -> vector<8x8xf32>
    %cst_15 = arith.constant dense<0xFF800000> : vector<8xf32>
    %18 = vector.multi_reduction <maximumf>, %17, %cst_15 [1] : vector<8x8xf32> to vector<8xf32>
    %19 = vector.shape_cast %18 : vector<8xf32> to vector<8x1xf32>
    %20 = vector.broadcast %19 : vector<8x1xf32> to vector<8x8xf32>
    %21 = arith.subf %17, %20 : vector<8x8xf32>
    %22 = math.exp %21 : vector<8x8xf32>
    %cst_16 = arith.constant dense<0.000000e+00> : vector<8xf32>
    %23 = vector.multi_reduction <add>, %22, %cst_16 [1] : vector<8x8xf32> to vector<8xf32>
    %24 = vector.shape_cast %23 : vector<8xf32> to vector<8x1xf32>
    %25 = tpu.reciprocal %24 {approx = true} : vector<8x1xf32> -> vector<8x1xf32>
    %26 = vector.broadcast %25 : vector<8x1xf32> to vector<8x8xf32>
    %27 = arith.mulf %22, %26 : vector<8x8xf32>
    %c0_17 = arith.constant 0 : index
    %c0_18 = arith.constant 0 : index
    %c0_19 = arith.constant 0 : index
    %c0_20 = arith.constant 0 : index
    %28 = vector.load %arg18[%c0_17, %c0_18, %c0_19, %c0_20] : memref<4x1x8x8xf32, #tpu.memory_space<vmem>>, vector<1x1x8x8xf32>
    %29 = vector.shape_cast %28 : vector<1x1x8x8xf32> to vector<8x8xf32>
    %30 = vector.shape_cast %27 : vector<8x8xf32> to vector<1x1x8x8xf32>
    tpu.vector_store %arg18[%c0_17, %c0_18, %c0_19, %c0_20], %30 {strides = array<i32>} : memref<4x1x8x8xf32, #tpu.memory_space<vmem>>, vector<1x1x8x8xf32>,
    %31 = arith.truncf %27 : vector<8x8xf32> to vector<8x8xbf16>
    %cst_21 = arith.constant dense<0.000000e+00> : vector<8x128xf32>
    %32 = tpu.matmul %31, %16, %cst_21 {dimension_numbers = #tpu.dot_dimension_numbers<[1], [0], [0], [1], [0, 0, 1, 1], [], []>} : vector<8x8xbf16>, vector<8x128xbf16>, vector<8x128xf32> -> vector<8x128xf32>
    %c0_22 = arith.constant 0 : index
    %c0_23 = arith.constant 0 : index
    %33 = vector.load %arg22[%c0_22, %c0_23] : memref<8x512xf32, #tpu.memory_space<vmem>>, vector<8x128xf32>
    tpu.vector_store %arg22[%c0_22, %c0_23], %32 {strides = array<i32>} : memref<8x512xf32, #tpu.memory_space<vmem>>, vector<8x128xf32>,
    %c0_24 = arith.constant 0 : index
    %c128 = arith.constant 128 : index
    %34 = vector.load %arg19[%c0_24, %c128] : memref<8x512xf32, #tpu.memory_space<vmem>>, vector<8x128xf32>
    %35 = arith.truncf %34 : vector<8x128xf32> to vector<8x128xbf16>
    %c0_25 = arith.constant 0 : index
    %c128_26 = arith.constant 128 : index
    %36 = vector.load %arg20[%c0_25, %c128_26] : memref<8x512xf32, #tpu.memory_space<vmem>>, vector<8x128xf32>
    %37 = arith.truncf %36 : vector<8x128xf32> to vector<8x128xbf16>
    %c0_27 = arith.constant 0 : index
    %c128_28 = arith.constant 128 : index
    %38 = vector.load %arg21[%c0_27, %c128_28] : memref<8x512xf32, #tpu.memory_space<vmem>>, vector<8x128xf32>
    %39 = arith.truncf %38 : vector<8x128xf32> to vector<8x128xbf16>
    %cst_29 = arith.constant dense<0.000000e+00> : vector<8x8xf32>
    %40 = tpu.matmul %35, %37, %cst_29 {dimension_numbers = #tpu.dot_dimension_numbers<[1], [1], [0], [0], [0, 0, 1, 0], [], []>} : vector<8x128xbf16>, vector<8x128xbf16>, vector<8x8xf32> -> vector<8x8xf32>
    %cst_30 = arith.constant dense<0xFF800000> : vector<8xf32>
    %41 = vector.multi_reduction <maximumf>, %40, %cst_30 [1] : vector<8x8xf32> to vector<8xf32>
    %42 = vector.shape_cast %41 : vector<8xf32> to vector<8x1xf32>
    %43 = vector.broadcast %42 : vector<8x1xf32> to vector<8x8xf32>
    %44 = arith.subf %40, %43 : vector<8x8xf32>
    %45 = math.exp %44 : vector<8x8xf32>
    %cst_31 = arith.constant dense<0.000000e+00> : vector<8xf32>
    %46 = vector.multi_reduction <add>, %45, %cst_31 [1] : vector<8x8xf32> to vector<8xf32>
    %47 = vector.shape_cast %46 : vector<8xf32> to vector<8x1xf32>
    %48 = tpu.reciprocal %47 {approx = true} : vector<8x1xf32> -> vector<8x1xf32>
    %49 = vector.broadcast %48 : vector<8x1xf32> to vector<8x8xf32>
    %50 = arith.mulf %45, %49 : vector<8x8xf32>
    %c1 = arith.constant 1 : index
    %c0_32 = arith.constant 0 : index
    %c0_33 = arith.constant 0 : index
    %c0_34 = arith.constant 0 : index
    %51 = vector.load %arg18[%c1, %c0_32, %c0_33, %c0_34] : memref<4x1x8x8xf32, #tpu.memory_space<vmem>>, vector<1x1x8x8xf32>
    %52 = vector.shape_cast %51 : vector<1x1x8x8xf32> to vector<8x8xf32>
    %53 = vector.shape_cast %50 : vector<8x8xf32> to vector<1x1x8x8xf32>
    tpu.vector_store %arg18[%c1, %c0_32, %c0_33, %c0_34], %53 {strides = array<i32>} : memref<4x1x8x8xf32, #tpu.memory_space<vmem>>, vector<1x1x8x8xf32>,
    %54 = arith.truncf %50 : vector<8x8xf32> to vector<8x8xbf16>
    %cst_35 = arith.constant dense<0.000000e+00> : vector<8x128xf32>
    %55 = tpu.matmul %54, %39, %cst_35 {dimension_numbers = #tpu.dot_dimension_numbers<[1], [0], [0], [1], [0, 0, 1, 1], [], []>} : vector<8x8xbf16>, vector<8x128xbf16>, vector<8x128xf32> -> vector<8x128xf32>
    %c0_36 = arith.constant 0 : index
    %c128_37 = arith.constant 128 : index
    %56 = vector.load %arg22[%c0_36, %c128_37] : memref<8x512xf32, #tpu.memory_space<vmem>>, vector<8x128xf32>
    tpu.vector_store %arg22[%c0_36, %c128_37], %55 {strides = array<i32>} : memref<8x512xf32, #tpu.memory_space<vmem>>, vector<8x128xf32>,
    %c0_38 = arith.constant 0 : index
    %c256 = arith.constant 256 : index
    %57 = vector.load %arg19[%c0_38, %c256] : memref<8x512xf32, #tpu.memory_space<vmem>>, vector<8x128xf32>
    %58 = arith.truncf %57 : vector<8x128xf32> to vector<8x128xbf16>
    %c0_39 = arith.constant 0 : index
    %c256_40 = arith.constant 256 : index
    %59 = vector.load %arg20[%c0_39, %c256_40] : memref<8x512xf32, #tpu.memory_space<vmem>>, vector<8x128xf32>
    %60 = arith.truncf %59 : vector<8x128xf32> to vector<8x128xbf16>
    %c0_41 = arith.constant 0 : index
    %c256_42 = arith.constant 256 : index
    %61 = vector.load %arg21[%c0_41, %c256_42] : memref<8x512xf32, #tpu.memory_space<vmem>>, vector<8x128xf32>
    %62 = arith.truncf %61 : vector<8x128xf32> to vector<8x128xbf16>
    %cst_43 = arith.constant dense<0.000000e+00> : vector<8x8xf32>
    %63 = tpu.matmul %58, %60, %cst_43 {dimension_numbers = #tpu.dot_dimension_numbers<[1], [1], [0], [0], [0, 0, 1, 0], [], []>} : vector<8x128xbf16>, vector<8x128xbf16>, vector<8x8xf32> -> vector<8x8xf32>
    %cst_44 = arith.constant dense<0xFF800000> : vector<8xf32>
    %64 = vector.multi_reduction <maximumf>, %63, %cst_44 [1] : vector<8x8xf32> to vector<8xf32>
    %65 = vector.shape_cast %64 : vector<8xf32> to vector<8x1xf32>
    %66 = vector.broadcast %65 : vector<8x1xf32> to vector<8x8xf32>
    %67 = arith.subf %63, %66 : vector<8x8xf32>
    %68 = math.exp %67 : vector<8x8xf32>
    %cst_45 = arith.constant dense<0.000000e+00> : vector<8xf32>
    %69 = vector.multi_reduction <add>, %68, %cst_45 [1] : vector<8x8xf32> to vector<8xf32>
    %70 = vector.shape_cast %69 : vector<8xf32> to vector<8x1xf32>
    %71 = tpu.reciprocal %70 {approx = true} : vector<8x1xf32> -> vector<8x1xf32>
    %72 = vector.broadcast %71 : vector<8x1xf32> to vector<8x8xf32>
    %73 = arith.mulf %68, %72 : vector<8x8xf32>
    %c2 = arith.constant 2 : index
    %c0_46 = arith.constant 0 : index
    %c0_47 = arith.constant 0 : index
    %c0_48 = arith.constant 0 : index
    %74 = vector.load %arg18[%c2, %c0_46, %c0_47, %c0_48] : memref<4x1x8x8xf32, #tpu.memory_space<vmem>>, vector<1x1x8x8xf32>
    %75 = vector.shape_cast %74 : vector<1x1x8x8xf32> to vector<8x8xf32>
    %76 = vector.shape_cast %73 : vector<8x8xf32> to vector<1x1x8x8xf32>
    tpu.vector_store %arg18[%c2, %c0_46, %c0_47, %c0_48], %76 {strides = array<i32>} : memref<4x1x8x8xf32, #tpu.memory_space<vmem>>, vector<1x1x8x8xf32>,
    %77 = arith.truncf %73 : vector<8x8xf32> to vector<8x8xbf16>
    %cst_49 = arith.constant dense<0.000000e+00> : vector<8x128xf32>
    %78 = tpu.matmul %77, %62, %cst_49 {dimension_numbers = #tpu.dot_dimension_numbers<[1], [0], [0], [1], [0, 0, 1, 1], [], []>} : vector<8x8xbf16>, vector<8x128xbf16>, vector<8x128xf32> -> vector<8x128xf32>
    %c0_50 = arith.constant 0 : index
    %c256_51 = arith.constant 256 : index
    %79 = vector.load %arg22[%c0_50, %c256_51] : memref<8x512xf32, #tpu.memory_space<vmem>>, vector<8x128xf32>
    tpu.vector_store %arg22[%c0_50, %c256_51], %78 {strides = array<i32>} : memref<8x512xf32, #tpu.memory_space<vmem>>, vector<8x128xf32>,
    %c0_52 = arith.constant 0 : index
    %c384 = arith.constant 384 : index
    %80 = vector.load %arg19[%c0_52, %c384] : memref<8x512xf32, #tpu.memory_space<vmem>>, vector<8x128xf32>
    %81 = arith.truncf %80 : vector<8x128xf32> to vector<8x128xbf16>
    %c0_53 = arith.constant 0 : index
    %c384_54 = arith.constant 384 : index
    %82 = vector.load %arg20[%c0_53, %c384_54] : memref<8x512xf32, #tpu.memory_space<vmem>>, vector<8x128xf32>
    %83 = arith.truncf %82 : vector<8x128xf32> to vector<8x128xbf16>
    %c0_55 = arith.constant 0 : index
    %c384_56 = arith.constant 384 : index
    %84 = vector.load %arg21[%c0_55, %c384_56] : memref<8x512xf32, #tpu.memory_space<vmem>>, vector<8x128xf32>
    %85 = arith.truncf %84 : vector<8x128xf32> to vector<8x128xbf16>
    %cst_57 = arith.constant dense<0.000000e+00> : vector<8x8xf32>
    %86 = tpu.matmul %81, %83, %cst_57 {dimension_numbers = #tpu.dot_dimension_numbers<[1], [1], [0], [0], [0, 0, 1, 0], [], []>} : vector<8x128xbf16>, vector<8x128xbf16>, vector<8x8xf32> -> vector<8x8xf32>
    %cst_58 = arith.constant dense<0xFF800000> : vector<8xf32>
    %87 = vector.multi_reduction <maximumf>, %86, %cst_58 [1] : vector<8x8xf32> to vector<8xf32>
    %88 = vector.shape_cast %87 : vector<8xf32> to vector<8x1xf32>
    %89 = vector.broadcast %88 : vector<8x1xf32> to vector<8x8xf32>
    %90 = arith.subf %86, %89 : vector<8x8xf32>
    %91 = math.exp %90 : vector<8x8xf32>
    %cst_59 = arith.constant dense<0.000000e+00> : vector<8xf32>
    %92 = vector.multi_reduction <add>, %91, %cst_59 [1] : vector<8x8xf32> to vector<8xf32>
    %93 = vector.shape_cast %92 : vector<8xf32> to vector<8x1xf32>
    %94 = tpu.reciprocal %93 {approx = true} : vector<8x1xf32> -> vector<8x1xf32>
    %95 = vector.broadcast %94 : vector<8x1xf32> to vector<8x8xf32>
    %96 = arith.mulf %91, %95 : vector<8x8xf32>
    %c3 = arith.constant 3 : index
    %c0_60 = arith.constant 0 : index
    %c0_61 = arith.constant 0 : index
    %c0_62 = arith.constant 0 : index
    %97 = vector.load %arg18[%c3, %c0_60, %c0_61, %c0_62] : memref<4x1x8x8xf32, #tpu.memory_space<vmem>>, vector<1x1x8x8xf32>
    %98 = vector.shape_cast %97 : vector<1x1x8x8xf32> to vector<8x8xf32>
    %99 = vector.shape_cast %96 : vector<8x8xf32> to vector<1x1x8x8xf32>
    tpu.vector_store %arg18[%c3, %c0_60, %c0_61, %c0_62], %99 {strides = array<i32>} : memref<4x1x8x8xf32, #tpu.memory_space<vmem>>, vector<1x1x8x8xf32>,
    %100 = arith.truncf %96 : vector<8x8xf32> to vector<8x8xbf16>
    %cst_63 = arith.constant dense<0.000000e+00> : vector<8x128xf32>
    %101 = tpu.matmul %100, %85, %cst_63 {dimension_numbers = #tpu.dot_dimension_numbers<[1], [0], [0], [1], [0, 0, 1, 1], [], []>} : vector<8x8xbf16>, vector<8x128xbf16>, vector<8x128xf32> -> vector<8x128xf32>
    %c0_64 = arith.constant 0 : index
    %c384_65 = arith.constant 384 : index
    %102 = vector.load %arg22[%c0_64, %c384_65] : memref<8x512xf32, #tpu.memory_space<vmem>>, vector<8x128xf32>
    tpu.vector_store %arg22[%c0_64, %c384_65], %101 {strides = array<i32>} : memref<8x512xf32, #tpu.memory_space<vmem>>, vector<8x128xf32>,
    %c0_66 = arith.constant 0 : index
    %c0_67 = arith.constant 0 : index
    %103 = vector.load %arg22[%c0_66, %c0_67] : memref<8x512xf32, #tpu.memory_space<vmem>>, vector<8x512xf32>
    %104 = arith.truncf %103 : vector<8x512xf32> to vector<8x512xbf16>
    %c0_68 = arith.constant 0 : index
    %c0_69 = arith.constant 0 : index
    %105 = vector.load %arg7[%c0_68, %c0_69] : memref<512x32xbf16, #tpu.memory_space<vmem>>, vector<512x32xbf16>
    %cst_70 = arith.constant dense<0.000000e+00> : vector<8x32xf32>
    %106 = tpu.matmul %104, %105, %cst_70 {dimension_numbers = #tpu.dot_dimension_numbers<[1], [0], [0], [1], [0, 0, 1, 1], [], []>} : vector<8x512xbf16>, vector<512x32xbf16>, vector<8x32xf32> -> vector<8x32xf32>
    %c0_71 = arith.constant 0 : index
    %c0_72 = arith.constant 0 : index
    %107 = vector.load %arg8[%c0_71, %c0_72] : memref<1x32xf32, #tpu.memory_space<vmem>>, vector<1x32xf32>
    %108 = vector.broadcast %107 : vector<1x32xf32> to vector<8x32xf32>
    %109 = arith.addf %106, %108 : vector<8x32xf32>
    %110 = arith.addf %109, %1 : vector<8x32xf32>
    %c0_73 = arith.constant 0 : index
    %c0_74 = arith.constant 0 : index
    %111 = vector.load %arg9[%c0_73, %c0_74] : memref<1x32xf32, #tpu.memory_space<vmem>>, vector<1x32xf32>
    %c0_75 = arith.constant 0 : index
    %c0_76 = arith.constant 0 : index
    %112 = vector.load %arg10[%c0_75, %c0_76] : memref<1x32xf32, #tpu.memory_space<vmem>>, vector<1x32xf32>
    %cst_77 = arith.constant dense<0.000000e+00> : vector<8xf32>
    %113 = vector.multi_reduction <add>, %110, %cst_77 [1] : vector<8x32xf32> to vector<8xf32>
    %114 = vector.shape_cast %113 : vector<8xf32> to vector<8x1xf32>
    %cst_78 = arith.constant 3.200000e+01 : f32
    %115 = vector.broadcast %cst_78 : f32 to vector<8x1xf32>
    %116 = arith.divf %114, %115 : vector<8x1xf32>
    %117 = vector.broadcast %116 : vector<8x1xf32> to vector<8x32xf32>
    %118 = arith.subf %110, %117 : vector<8x32xf32>
    %119 = arith.mulf %118, %118 : vector<8x32xf32>
    %cst_79 = arith.constant dense<0.000000e+00> : vector<8xf32>
    %120 = vector.multi_reduction <add>, %119, %cst_79 [1] : vector<8x32xf32> to vector<8xf32>
    %121 = vector.shape_cast %120 : vector<8xf32> to vector<8x1xf32>
    %cst_80 = arith.constant 0.0322580636 : f32
    %122 = vector.broadcast %cst_80 : f32 to vector<8x1xf32>
    %123 = arith.mulf %121, %122 : vector<8x1xf32>
    %124 = math.sqrt %123 : vector<8x1xf32>
    %cst_81 = arith.constant 1.000000e-03 : f32
    %125 = vector.broadcast %cst_81 : f32 to vector<8x1xf32>
    %126 = arith.addf %124, %125 : vector<8x1xf32>
    %127 = tpu.reciprocal %126 {approx = true} : vector<8x1xf32> -> vector<8x1xf32>
    %128 = vector.broadcast %116 : vector<8x1xf32> to vector<8x32xf32>
    %129 = arith.subf %110, %128 : vector<8x32xf32>
    %130 = vector.broadcast %127 : vector<8x1xf32> to vector<8x32xf32>
    %131 = arith.mulf %129, %130 : vector<8x32xf32>
    %132 = vector.broadcast %111 : vector<1x32xf32> to vector<8x32xf32>
    %133 = arith.mulf %131, %132 : vector<8x32xf32>
    %134 = vector.broadcast %112 : vector<1x32xf32> to vector<8x32xf32>
    %135 = arith.addf %133, %134 : vector<8x32xf32>
    %136 = arith.truncf %135 : vector<8x32xf32> to vector<8x32xbf16>
    %c0_82 = arith.constant 0 : index
    %c0_83 = arith.constant 0 : index
    %137 = vector.load %arg11[%c0_82, %c0_83] : memref<32x64xbf16, #tpu.memory_space<vmem>>, vector<32x64xbf16>
    %cst_84 = arith.constant dense<0.000000e+00> : vector<8x64xf32>
    %138 = tpu.matmul %136, %137, %cst_84 {dimension_numbers = #tpu.dot_dimension_numbers<[1], [0], [0], [1], [0, 0, 1, 1], [], []>} : vector<8x32xbf16>, vector<32x64xbf16>, vector<8x64xf32> -> vector<8x64xf32>
    %c0_85 = arith.constant 0 : index
    %c0_86 = arith.constant 0 : index
    %139 = vector.load %arg12[%c0_85, %c0_86] : memref<1x64xf32, #tpu.memory_space<vmem>>, vector<1x64xf32>
    %140 = vector.broadcast %139 : vector<1x64xf32> to vector<8x64xf32>
    %141 = arith.addf %138, %140 : vector<8x64xf32>
    %cst_87 = arith.constant 0.000000e+00 : f32
    %142 = vector.broadcast %cst_87 : f32 to vector<8x64xf32>
    %143 = arith.maximumf %141, %142 : vector<8x64xf32>
    %144 = arith.truncf %143 : vector<8x64xf32> to vector<8x64xbf16>
    %c0_88 = arith.constant 0 : index
    %c0_89 = arith.constant 0 : index
    %145 = vector.load %arg13[%c0_88, %c0_89] : memref<64x32xbf16, #tpu.memory_space<vmem>>, vector<64x32xbf16>
    %cst_90 = arith.constant dense<0.000000e+00> : vector<8x32xf32>
    %146 = tpu.matmul %144, %145, %cst_90 {dimension_numbers = #tpu.dot_dimension_numbers<[1], [0], [0], [1], [0, 0, 1, 1], [], []>} : vector<8x64xbf16>, vector<64x32xbf16>, vector<8x32xf32> -> vector<8x32xf32>
    %c0_91 = arith.constant 0 : index
    %c0_92 = arith.constant 0 : index
    %147 = vector.load %arg14[%c0_91, %c0_92] : memref<1x32xf32, #tpu.memory_space<vmem>>, vector<1x32xf32>
    %148 = vector.broadcast %147 : vector<1x32xf32> to vector<8x32xf32>
    %149 = arith.addf %146, %148 : vector<8x32xf32>
    %150 = arith.addf %149, %135 : vector<8x32xf32>
    %c0_93 = arith.constant 0 : index
    %c0_94 = arith.constant 0 : index
    %151 = vector.load %arg15[%c0_93, %c0_94] : memref<1x32xf32, #tpu.memory_space<vmem>>, vector<1x32xf32>
    %c0_95 = arith.constant 0 : index
    %c0_96 = arith.constant 0 : index
    %152 = vector.load %arg16[%c0_95, %c0_96] : memref<1x32xf32, #tpu.memory_space<vmem>>, vector<1x32xf32>
    %cst_97 = arith.constant dense<0.000000e+00> : vector<8xf32>
    %153 = vector.multi_reduction <add>, %150, %cst_97 [1] : vector<8x32xf32> to vector<8xf32>
    %154 = vector.shape_cast %153 : vector<8xf32> to vector<8x1xf32>
    %cst_98 = arith.constant 3.200000e+01 : f32
    %155 = vector.broadcast %cst_98 : f32 to vector<8x1xf32>
    %156 = arith.divf %154, %155 : vector<8x1xf32>
    %157 = vector.broadcast %156 : vector<8x1xf32> to vector<8x32xf32>
    %158 = arith.subf %150, %157 : vector<8x32xf32>
    %159 = arith.mulf %158, %158 : vector<8x32xf32>
    %cst_99 = arith.constant dense<0.000000e+00> : vector<8xf32>
    %160 = vector.multi_reduction <add>, %159, %cst_99 [1] : vector<8x32xf32> to vector<8xf32>
    %161 = vector.shape_cast %160 : vector<8xf32> to vector<8x1xf32>
    %cst_100 = arith.constant 0.0322580636 : f32
    %162 = vector.broadcast %cst_100 : f32 to vector<8x1xf32>
    %163 = arith.mulf %161, %162 : vector<8x1xf32>
    %164 = math.sqrt %163 : vector<8x1xf32>
    %cst_101 = arith.constant 1.000000e-03 : f32
    %165 = vector.broadcast %cst_101 : f32 to vector<8x1xf32>
    %166 = arith.addf %164, %165 : vector<8x1xf32>
    %167 = tpu.reciprocal %166 {approx = true} : vector<8x1xf32> -> vector<8x1xf32>
    %168 = vector.broadcast %156 : vector<8x1xf32> to vector<8x32xf32>
    %169 = arith.subf %150, %168 : vector<8x32xf32>
    %170 = vector.broadcast %167 : vector<8x1xf32> to vector<8x32xf32>
    %171 = arith.mulf %169, %170 : vector<8x32xf32>
    %172 = vector.broadcast %151 : vector<1x32xf32> to vector<8x32xf32>
    %173 = arith.mulf %171, %172 : vector<8x32xf32>
    %174 = vector.broadcast %152 : vector<1x32xf32> to vector<8x32xf32>
    %175 = arith.addf %173, %174 : vector<8x32xf32>
    %c0_102 = arith.constant 0 : index
    %c0_103 = arith.constant 0 : index
    %c0_104 = arith.constant 0 : index
    %176 = vector.load %arg17[%c0_102, %c0_103, %c0_104] : memref<1x8x32xf32, #tpu.memory_space<vmem>>, vector<1x8x32xf32>
    %177 = vector.shape_cast %176 : vector<1x8x32xf32> to vector<8x32xf32>
    %178 = vector.shape_cast %175 : vector<8x32xf32> to vector<1x8x32xf32>
    tpu.vector_store %arg17[%c0_102, %c0_103, %c0_104], %178 {strides = array<i32>} : memref<1x8x32xf32, #tpu.memory_space<vmem>>, vector<1x8x32xf32>,
    return
  }
  func.func @transform_0(%arg0: i32, %arg1: i32) -> (i32, i32, i32) {
    %c0_i32 = arith.constant 0 : i32
    %c0_i32_0 = arith.constant 0 : i32
    return %arg0, %arg1, %c0_i32 : i32, i32, i32
  }
  func.func @transform_1(%arg0: i32, %arg1: i32) -> (i32, i32, i32) {
    %c0_i32 = arith.constant 0 : i32
    %c0_i32_0 = arith.constant 0 : i32
    %c0_i32_1 = arith.constant 0 : i32
    return %arg0, %c0_i32, %c0_i32_0 : i32, i32, i32
  }
  func.func @transform_2(%arg0: i32, %arg1: i32) -> (i32, i32) {
    %c0_i32 = arith.constant 0 : i32
    %c0_i32_0 = arith.constant 0 : i32
    %c0_i32_1 = arith.constant 0 : i32
    return %c0_i32, %c0_i32_0 : i32, i32
  }
  func.func @transform_3(%arg0: i32, %arg1: i32) -> (i32, i32) {
    %c0_i32 = arith.constant 0 : i32
    %c0_i32_0 = arith.constant 0 : i32
    %c0_i32_1 = arith.constant 0 : i32
    return %c0_i32, %c0_i32_0 : i32, i32
  }
  func.func @transform_4(%arg0: i32, %arg1: i32) -> (i32, i32) {
    %c0_i32 = arith.constant 0 : i32
    %c0_i32_0 = arith.constant 0 : i32
    %c0_i32_1 = arith.constant 0 : i32
    return %c0_i32, %c0_i32_0 : i32, i32
  }
  func.func @transform_5(%arg0: i32, %arg1: i32) -> (i32, i32) {
    %c0_i32 = arith.constant 0 : i32
    %c0_i32_0 = arith.constant 0 : i32
    %c0_i32_1 = arith.constant 0 : i32
    return %c0_i32, %c0_i32_0 : i32, i32
  }
  func.func @transform_6(%arg0: i32, %arg1: i32) -> (i32, i32) {
    %c0_i32 = arith.constant 0 : i32
    %c0_i32_0 = arith.constant 0 : i32
    %c0_i32_1 = arith.constant 0 : i32
    return %c0_i32, %c0_i32_0 : i32, i32
  }
  func.func @transform_7(%arg0: i32, %arg1: i32) -> (i32, i32) {
    %c0_i32 = arith.constant 0 : i32
    %c0_i32_0 = arith.constant 0 : i32
    %c0_i32_1 = arith.constant 0 : i32
    return %c0_i32, %c0_i32_0 : i32, i32
  }
  func.func @transform_8(%arg0: i32, %arg1: i32) -> (i32, i32) {
    %c0_i32 = arith.constant 0 : i32
    %c0_i32_0 = arith.constant 0 : i32
    %c0_i32_1 = arith.constant 0 : i32
    return %c0_i32, %c0_i32_0 : i32, i32
  }
  func.func @transform_9(%arg0: i32, %arg1: i32) -> (i32, i32) {
    %c0_i32 = arith.constant 0 : i32
    %c0_i32_0 = arith.constant 0 : i32
    %c0_i32_1 = arith.constant 0 : i32
    return %c0_i32, %c0_i32_0 : i32, i32
  }
  func.func @transform_10(%arg0: i32, %arg1: i32) -> (i32, i32) {
    %c0_i32 = arith.constant 0 : i32
    %c0_i32_0 = arith.constant 0 : i32
    %c0_i32_1 = arith.constant 0 : i32
    return %c0_i32, %c0_i32_0 : i32, i32
  }
  func.func @transform_11(%arg0: i32, %arg1: i32) -> (i32, i32) {
    %c0_i32 = arith.constant 0 : i32
    %c0_i32_0 = arith.constant 0 : i32
    %c0_i32_1 = arith.constant 0 : i32
    return %c0_i32, %c0_i32_0 : i32, i32
  }
  func.func @transform_12(%arg0: i32, %arg1: i32) -> (i32, i32) {
    %c0_i32 = arith.constant 0 : i32
    %c0_i32_0 = arith.constant 0 : i32
    %c0_i32_1 = arith.constant 0 : i32
    return %c0_i32, %c0_i32_0 : i32, i32
  }
  func.func @transform_13(%arg0: i32, %arg1: i32) -> (i32, i32) {
    %c0_i32 = arith.constant 0 : i32
    %c0_i32_0 = arith.constant 0 : i32
    %c0_i32_1 = arith.constant 0 : i32
    return %c0_i32, %c0_i32_0 : i32, i32
  }
  func.func @transform_14(%arg0: i32, %arg1: i32) -> (i32, i32) {
    %c0_i32 = arith.constant 0 : i32
    %c0_i32_0 = arith.constant 0 : i32
    %c0_i32_1 = arith.constant 0 : i32
    return %c0_i32, %c0_i32_0 : i32, i32
  }
  func.func @transform_15(%arg0: i32, %arg1: i32) -> (i32, i32, i32) {
    %c0_i32 = arith.constant 0 : i32
    %c0_i32_0 = arith.constant 0 : i32
    return %arg0, %arg1, %c0_i32 : i32, i32, i32
  }
  func.func @transform_16(%arg0: i32, %arg1: i32) -> (i32, i32, i32, i32) {
    %c0_i32 = arith.constant 0 : i32
    %c0_i32_0 = arith.constant 0 : i32
    %c0_i32_1 = arith.constant 0 : i32
    return %c0_i32, %arg0, %arg1, %c0_i32_0 : i32, i32, i32, i32
  }
}

</mosaic_0001>

<bundles_post_ra>
// kernel: tpu_custom_call.1
= control target key start
LH: loop header
LB: loop body
LE: loop exit
PB: predicated region body
PF: predicated region fallthrough
CT: control target
= control target key end

     0   :  { %s3211_s0 = inlined_call_operand.vmem [shape: f32[2,8,32], index: 0, kind: input, shape index: {}]   ;;  %s3212_s1 = inlined_call_operand.vmem [shape: f32[2,8,32], index: 1, kind: input, shape index: {}]   ;;  %s3213_s2 = inlined_call_operand.vmem [shape: bf16[32,512], index: 2, kind: input, shape index: {}]   ;;  %s3214_s3 = inlined_call_operand.vmem [shape: bf16[32,512], index: 3, kind: input, shape index: {}]   ;;  %s3215_s4 = inlined_call_operand.vmem [shape: bf16[32,512], index: 4, kind: input, shape index: {}]   ;;  %s3216_s5 = inlined_call_operand.vmem [shape: bf16[512,32], index: 5, kind: input, shape index: {}]   ;;  %s3217_s6 = inlined_call_operand.vmem [shape: f32[1,32], index: 6, kind: input, shape index: {}]   ;;  %s3218_s7 = inlined_call_operand.vmem [shape: f32[1,32], index: 7, kind: input, shape index: {}]   ;;  %s3219_s8 = inlined_call_operand.vmem [shape: f32[1,32], index: 8, kind: input, shape index: {}]   ;;  %s3220_s9 = inlined_call_operand.vmem [shape: bf16[32,64], index: 9, kind: input, shape index: {}]   ;;  %s3221_s10 = inlined_call_operand.vmem [shape: f32[1,64], index: 10, kind: input, shape index: {}]   ;;  %s3222_s11 = inlined_call_operand.vmem [shape: bf16[64,32], index: 11, kind: input, shape index: {}]   ;;  %s3223_s12 = inlined_call_operand.vmem [shape: f32[1,32], index: 12, kind: input, shape index: {}]   ;;  %s3224_s13 = inlined_call_operand.vmem [shape: f32[1,32], index: 13, kind: input, shape index: {}]   ;;  %s3225_s14 = inlined_call_operand.vmem [shape: f32[1,32], index: 14, kind: input, shape index: {}]   ;;  %s3226_s15 = inlined_call_operand.hbm [shape: f32[2,8,32], index: 15, kind: output, shape index: {0}]   ;;  %s3227_s16 = inlined_call_operand.hbm [shape: f32[4,2,8,8], index: 16, kind: output, shape index: {1}]  }
   0x1   :  { %3237 = sst [smem:[#allocation19_spill]] %s3211_s0 }
   0x2   :  { %3238 = sst [smem:[#allocation20_spill]] %s3212_s1 }
   0x3   :  { %3239 = sst [smem:[#allocation21_spill]] %s3226_s15 }
   0x4   :  { %22 = vsyncpa [#allocation7], 0 }
   0x5   :  { %24 = vsyncpa [#allocation7 + $0x1], 0 }
   0x6   :  { %25 = vsyncpa [#allocation9], 0 }
   0x7   :  { %27 = vsyncpa [#allocation9 + $0x1], 0  ;;  %s2759_s21 = smov 0   ;;  %s2761_s22 = smov 0  }
   0x8   :  { %s2763_s23 = smov 0   ;;  %s2765_s24 = smov 0  }
   0x9   :  { %s2767_s25 = smov 0   ;;  %s2769_s26 = smov 0  }
   0xa LB: > { %3240 = sst [smem:[#allocation12_spill]] %s2644_s21  ;;  %s2155_s27 = sadd.s32 4294967295, %s2664_s26   ;;  %s2664_s26 = sphi %s2769_s26, %s33_s26   ;;  %s2660_s25 = sphi %s2767_s25, %s3260_s25   ;;  %s2656_s24 = sphi %s2765_s24, %s3259_s24   ;;  %s2652_s23 = sphi %s2763_s23, %s3258_s23   ;;  %s2648_s22 = sphi %s2761_s22, %s3262_s22   ;;  %s2644_s21 = sphi %s2759_s21, %s3261_s21  }
   0xb   : > { %3241 = sst [smem:[#allocation13_spill]] %s2652_s23  ;;  %s2156_s28 = sadd.s32 4294967294, %s2664_s26  }
   0xc   : > { %3242 = sst [smem:[#allocation14_spill]] %s2660_s25  ;;  %s45_s29 = sadd.s32 1, %s2660_s25 }
   0xd   : > { %3243 = sst [smem:[#allocation15_spill]] %s2664_s26  ;;  %s381_s30 = sadd.s32 1, %s2652_s23 }
   0xe   : > { %p47_p0 = scmp.ge.s32.totalorder %s45_s29, 2  ;;  %p391_p1 = scmp.ne.s32.totalorder %s2652_s23, %s2648_s22 }
   0xf   : > { %p392_p2 = scmp.eq.s32.totalorder %s2155_s27, 1  ;;  %p397_p3 = scmp.ne.s32.totalorder %s2648_s22, %s2644_s21 }
  0x10   : > { %s3264_s29 = smov (%p47_p0, %s45_s29), 0  ;;  %p398_p5 = scmp.eq.s32.totalorder %s2156_s28, 1 }
  0x11   : > { %3244 = sst [smem:[#allocation16_spill]] %s3264_s29  ;;  %p2799_p4 = por %p392_p2, %p391_p1 }
  0x12   : > { %s376_s17 = ssub.s32 %s2660_s25, %s3264_s29  ;;  %p2159_p6 = scmp.ge.s32.totalorder %s2664_s26, 1 }
  0x13   : > { %p379_p7 = scmp.eq.s32.totalorder %s376_s17, 0  ;;  %p2806_p8 = por %p398_p5, %p397_p3 }
  0x14   : > { %p500_p9 = scmp.lt.s32.totalorder %s2664_s26, 3 }
  0x15   : > { %s3246_s18 = scalar_select %p2806_p8, 1, 0 }
  0x16   : > { %s2812_s19 = scalar_select %p379_p7, %s2652_s23, %s381_s30  }
  0x17   : > { %3247 = sst [smem:[#allocation17_spill]] %s3246_s18  ;;  %p501_p10 = pnand %p2159_p6, %p500_p9 }
  0x18   : > { %3248 = sst [smem:[#allocation18_spill]] %s2812_s19  ;;  %v2456_v0 = vld [vmem:[%s3214_s3 + $0x4] ss:$16 sps:$4 sm:$0xff] (!%p501_p10)   ;;  %p561_p11 = scmp.lt.s32.totalorder (!%p501_p10), %s2656_s24, 1  ;;  %v2458_v1 = vld [vmem:[%s3214_s3] ss:$16 sps:$4 sm:$0xff] (!%p501_p10)  }
  0x19   : > { %504 = sbr.rel (%p501_p10) target bundleno = 2363 (0x93b), region = 80  ;;  %v2666_v2 = vmov (!%p501_p10), 0   ;;  %632 = vmatprep.subr.bf16.mxu0 (!%p501_p10), %v2456_v0  ;;  %v2459_v3 = vld [vmem:[%s3214_s3 + $0x24] ss:$16 sps:$4 sm:$0xff] (!%p501_p10)   ;;  %v2461_v4 = vld [vmem:[%s3214_s3 + $0x20] ss:$16 sps:$4 sm:$0xff] (!%p501_p10)  }
  0x1a   : > { %664 = vmatprep.mubr.bf16.mxu0 (!%p501_p10), %v2666_v2  ;;  %705 = vmatprep.mubr.bf16.mxu1 (!%p501_p10), %v2666_v2  ;;  %v2464_v5 = vld [vmem:[%s3215_s4 + $0x4] ss:$16 sps:$4 sm:$0xff] (!%p501_p10)   ;;  %s3249_s1 = sld [smem:[#allocation20_spill]] (!%p501_p10)  ;;  %v2462_v7 = vld [vmem:[%s3215_s4] ss:$16 sps:$4 sm:$0xff] (!%p501_p10)   ;;  %vm628_vm0 = vcmask (!%p501_p10), 261120  }
  0x1b   : > { %633 = vmatpush1.bf16.msra.mxu0 (!%p501_p10), %v2458_v1  ;;  %v2468_v8 = vld [vmem:[%s3214_s3 + $0xc] ss:$16 sps:$4 sm:$0xff] (!%p501_p10)   ;;  %v2470_v10 = vld [vmem:[%s3214_s3 + $0x8] ss:$16 sps:$4 sm:$0xff] (!%p501_p10)   ;;  %v2467_v11 = vld [vmem:[%s3215_s4 + $0x24] ss:$16 sps:$4 sm:$0xff] (!%p501_p10)  }
  0x1c   : > { %634 = vmatprep.subr.bf16.mxu0 (!%p501_p10), %v2459_v3  ;;  %673 = vmatprep.subr.bf16.mxu1 (!%p501_p10), %v2468_v8  ;;  %v2474_v12 = vld [vmem:[%s3214_s3 + $0x2c] ss:$16 sps:$4 sm:$0xff] (!%p501_p10)   ;;  %v2476_v13 = vld [vmem:[%s3214_s3 + $0x28] ss:$16 sps:$4 sm:$0xff] (!%p501_p10)   ;;  %v2465_v14 = vld [vmem:[%s3215_s4 + $0x20] ss:$16 sps:$4 sm:$0xff] (!%p501_p10)  }
  0x1d   : > { %674 = vmatpush1.bf16.msra.mxu1 (!%p501_p10), %v2470_v10  ;;  %v2473_v15 = vld [vmem:[%s3213_s2 + $0x4] ss:$16 sps:$4 sm:$0xff] (!%p501_p10)   ;;  %v2482_v16 = vld [vmem:[%s3215_s4 + $0xc] ss:$16 sps:$4 sm:$0xff] (!%p501_p10)   ;;  %v2471_v17 = vld [vmem:[%s3213_s2] ss:$16 sps:$4 sm:$0xff] (!%p501_p10)  }
  0x1e   : > { %675 = vmatprep.subr.bf16.mxu1 (!%p501_p10), %v2474_v12  ;;  %v2480_v18 = vld [vmem:[%s3215_s4 + $0x8] ss:$16 sps:$4 sm:$0xff] (!%p501_p10)   ;;  %s3250_s29 = sld [smem:[#allocation19_spill]] (!%p501_p10)  ;;  %v2485_v19 = vld [vmem:[%s3215_s4 + $0x2c] ss:$16 sps:$4 sm:$0xff] (!%p501_p10)   ;;  %v2667_v29 = vmov (!%p501_p10), 0.0  }
  0x1f   : > { %635 = vmatpush1.bf16.msra.mxu0 (!%p501_p10), %v2461_v4  ;;  %v2479_v20 = vld [vmem:[%s3213_s2 + $0x24] ss:$16 sps:$4 sm:$0xff] (!%p501_p10)   ;;  %v2483_v21 = vld [vmem:[%s3215_s4 + $0x28] ss:$16 sps:$4 sm:$0xff] (!%p501_p10)   ;;  %v2488_v22 = vld [vmem:[%s3213_s2 + $0xc] ss:$16 sps:$4 sm:$0xff] (!%p501_p10)  }
  0x20   : > { %s2825_s25 = scalar_select %p561_p11, %s2656_s24, 1  ;;  %766 = vmatprep.subr.bf16.mxu0 %v2464_v5  ;;  %v2477_v24 = vld [vmem:[%s3213_s2 + $0x20] ss:$16 sps:$4 sm:$0xff]   ;;  %v2486_v25 = vld [vmem:[%s3213_s2 + $0x8] ss:$16 sps:$4 sm:$0xff]   ;;  %vm2668_vm1 = vmmov 0  }
  0x21   : > { %676 = vmatpush1.bf16.msra.mxu1 %v2476_v13  ;;  %v2491_v26 = vld [vmem:[%s3213_s2 + $0x2c] ss:$16 sps:$4 sm:$0xff]   ;;  %v2489_v28 = vld [vmem:[%s3213_s2 + $0x28] ss:$16 sps:$4 sm:$0xff]   ;;  %vm1058_vm2 = vcmask 1043456   ;;  %vm1041_vm3 = vcmask 64512  }
  0x22   : > { %s2162_s19 = sshll.u32 %s2825_s25, 3  ;;  %807 = vmatprep.subr.bf16.mxu1 %v2482_v16  ;;  %s2972_s26 = sand.u32 1, %s2648_s22   ;;  %vm1921_vm6 = vcmask 523264  }
  0x23   : > { %s571_s21 = scalar_lea.vmem %s3249_s1, %s2162_s19  ;;  %s3236_s30 = sshll.u32 %s2656_s24, 7 }
  0x24   : > { %v578_v6 = vld [vmem:[%s571_s21] sm:$0xff]  ;;  %s567_s28 = scalar_lea.vmem %s3250_s29, %s2162_s19  ;;  %s2161_s29 = sshll.u32 %s2972_s26, 5 }
  0x25   : > { %v579_v9 = vpack.c.bf16 %v578_v6, %v578_v6  ;;  %v2887_v23 = vld [vmem:[%s567_s28] sm:$0xff]  ;;  %s2975_s17 = scalar_lea.vmem [#allocation8], %s2161_s29  ;;  %s3121_s20 = scalar_lea.hbm %s3227_s16, %s3236_s30 }
  0x26   : > { %v852_v27 = vpack.c.bf16 %v2887_v23, %v2887_v23  ;;  %s2036_s27 = sshll.u32 %s2975_s17, 4  ;;  %s2009_s23 = scalar_lea.sflag [#allocation9], %s2972_s26  ;;  %s3124_s27 = int_to_ptr.vmem [resolvable:$true] %s2036_s27 }
  0x27   : > { %2172 = vmatmul.mubr.msk.bf16.vlgmr.msra.gmra.mrb[0].mxu0 %vm628_vm0, %v579_v9  ;;  %2173 = vmatmul.mubr.msk.bf16.vlgmr.msra.gmra.mrb[0].mxu1 %vm628_vm0, %v579_v9  ;;  %s2554_s21 = scalar_lea.vmem %s3124_s27, 512  ;;  %s2669_s18 = smov [#allocation8]  }
  0x28   : > { %767 = vmatpush1.bf16.msra.mxu0 %v2462_v7  ;;  %798 = vmatprep.mubr.bf16.mxu0 %v2666_v2  ;;  %p2555_p12 = scmp.ne.s32.totalorder %s3124_s27, %s2554_s21  ;;  %s2558_s19 = sshll.u32 %s2669_s18, 4  ;;  %s2559_s19 = int_to_ptr.vmem [resolvable:$false] %s2558_s19 }
  0x29   : > { %768 = vmatprep.subr.bf16.mxu0 %v2467_v11  ;;  %808 = vmatpush1.bf16.msra.mxu1 %v2480_v18  ;;  %s2560_s15 = scalar_lea.vmem %s2559_s19, 1024  ;;  %p2561_p1 = scmp.lt.s32.totalorder %s3124_s27, %s2559_s19 }
  0x2a   : > { %839 = vmatprep.mubr.bf16.mxu1 %v2666_v2  ;;  %809 = vmatprep.subr.bf16.mxu1 %v2485_v19  ;;  %p2556_p13 = pnand %p2555_p12, %p2799_p4  ;;  %p2562_p2 = scmp.lt.s32.totalorder %s2560_s15, %s2554_s21 }
  0x2c   : > { %769 = vmatpush1.bf16.msra.mxu0 %v2465_v14  ;;  %p2557_p0 = pneg %p2556_p13  ;;  %p2563_p3 = por %p2562_p2, %p2561_p1 }
  0x2d   : > { %905 = vmatprep.subr.bf16.mxu0 %v2473_v15  ;;  %810 = vmatpush1.bf16.msra.mxu1 %v2483_v21 }
  0x2e   : > { %946 = vmatprep.subr.bf16.mxu1 %v2488_v22  ;;  %p2564_p5 = pnand %p2563_p3, %p2557_p0 }
  0x2f   : > { %2182 = vmatmul.mubr.msk.bf16.vlgmr.msra.gmra.mrb[4].mxu0 %vm628_vm0, %v579_v9 }
  0x30   : > { %906 = vmatpush1.bf16.msra.mxu0 %v2471_v17  ;;  %937 = vmatprep.mubr.bf16.mxu0 %v2666_v2 }
  0x31   : > { %907 = vmatprep.subr.bf16.mxu0 %v2479_v20  ;;  %2183 = vmatmul.mubr.msk.bf16.vlgmr.msra.gmra.mrb[4].mxu1 %vm628_vm0, %v579_v9 }
  0x32   : > { %947 = vmatpush1.bf16.msra.mxu1 %v2486_v25  ;;  %978 = vmatprep.mubr.bf16.mxu1 %v2666_v2 }
  0x33   : > { %948 = vmatprep.subr.bf16.mxu1 %v2491_v26 }
  0x34   : > { %908 = vmatpush1.bf16.msra.mxu0 %v2477_v24 }
  0x35   : > { %2322 = vmatprep.subr.bf16.mxu0 %v2667_v29 }
  0x36   : > { %949 = vmatpush1.bf16.msra.mxu1 %v2489_v28 }
  0x37   : > { %2192 = vmatmul.mubr.msk.bf16.vlgmr.msra.gmra.mrb[8].mxu0 %vm628_vm0, %v852_v27  ;;  %2328 = vmatprep.subr.bf16.mxu1 %v2667_v29 }
  0x38   : > { %2324 = vmatprep.mubr.msk.bf16.mxu0 %vm2668_vm1, %v2667_v29 }
  0x39   : > { %2193 = vmatmul.mubr.msk.bf16.vlgmr.msra.gmra.mrb[8].mxu1 %vm628_vm0, %v852_v27 }
  0x3a   : > { %2330 = vmatprep.mubr.msk.bf16.mxu1 %vm2668_vm1, %v2667_v29 }
  0xfa   : > { %v666_v30 = vpop.f32.mrb[0].mxu0  ;;  %v707_v35 = vpop.f32.mrb[0].mxu1 }
  0xfb   : > { %v998_v31 = vpack.c.bf16 %v666_v30, %v666_v30  ;;  %v668_v32 = vpop.f32.mrb[1].mxu0  ;;  %v709_v36 = vpop.f32.mrb[1].mxu1  ;;  %v1213_v4 = vpack.c.bf16 %v707_v35, %v707_v35 }
  0xfc   : > { %v670_v33 = vpop.f32.mrb[2].mxu0  ;;  %v711_v38 = vpop.f32.mrb[2].mxu1  ;;  %v1106_v61 = vpack.c.bf16 %v668_v32, %v668_v32  ;;  %v1320_v7 = vpack.c.bf16 %v709_v36, %v709_v36 }
  0xfd   : > { %v671_v34 = vpop.f32.mrb[3].mxu0  ;;  %2323 = vmatpush3.bf16.xpose.msra.mxu0 %v998_v31  ;;  %v712_v41 = vpop.f32.mrb[3].mxu1 }
  0xfe   : > { %2334 = vmatprep.subr.bf16.mxu0 %v2667_v29 }
 0x102   : > { %v800_v37 = vpop.f32.mrb[4].mxu0 }
 0x103   : > { %v1000_v39 = vpack.c.bf16 %v800_v37, %v800_v37  ;;  %v802_v40 = vpop.f32.mrb[5].mxu0 }
 0x104   : > { %v1108_v42 = vpack.c.bf16 %v802_v40, %v802_v40  ;;  %v804_v43 = vpop.f32.mrb[6].mxu0  ;;  %v841_v47 = vpop.f32.mrb[4].mxu1 }
 0x105   : > { %v1060_v44 = vsel %vm1058_vm2, %v1000_v39, 0  ;;  %v805_v45 = vpop.f32.mrb[7].mxu0  ;;  %v1215_v48 = vpack.c.bf16 %v841_v47, %v841_v47  ;;  %v843_v49 = vpop.f32.mrb[5].mxu1 }
 0x106   : > { %v2916_v46 = vsel %vm1058_vm2, %v1108_v42, 0  ;;  %2329 = vmatpush3.bf16.msra.mxu1 %v1060_v44  ;;  %v1322_v51 = vpack.c.bf16 %v843_v49, %v843_v49  ;;  %v845_v52 = vpop.f32.mrb[6].mxu1 }
 0x107   : > { %2340 = vmatprep.subr.bf16.mxu1 %v2667_v29  ;;  %v2920_v55 = vsel %vm1058_vm2, %v1215_v48, 0  ;;  %v846_v56 = vpop.f32.mrb[7].mxu1 }
 0x108   : > { %v2923_v58 = vsel %vm1058_vm2, %v1322_v51, 0  ;;  %v2494_v56 = vld [vmem:[%s3216_s5 + $0x48] sm:$0xff]  }
 0x10a   : > { %v939_v50 = vpop.f32.mrb[8].mxu0 }
 0x10b   : > { %v987_v53 = vmul.f32 0.17677669, %v939_v50  ;;  %v941_v54 = vpop.f32.mrb[9].mxu0 }
 0x10c   : > { %v943_v57 = vpop.f32.mrb[10].mxu0  ;;  %v980_v62 = vpop.f32.mrb[8].mxu1  ;;  %v988_v63 = vmul.f32 0.17677669, %v941_v54  ;;  %v2493_v54 = vld [vmem:[%s3216_s5] sm:$0xff]  }
 0x10d   : > { %v996_v59 = vpack.c.bf16 %v987_v53, %v987_v53  ;;  %v944_v60 = vpop.f32.mrb[11].mxu0  ;;  %v982_v0 = vpop.f32.mrb[9].mxu1  ;;  %v989_v5 = vmul.f32 0.17677669, %v980_v62  ;;  %v2492_v53 = vld [vmem:[%s3216_s5 + $0x40] sm:$0xff]   ;;  %v2495_v57 = vld [vmem:[%s3216_s5 + $0x8] sm:$0xff]  }
 0x10e   : > { %v984_v1 = vpop.f32.mrb[10].mxu1  ;;  %v1104_v3 = vpack.c.bf16 %v988_v63, %v988_v63  ;;  %v990_v8 = vmul.f32 0.17677669, %v982_v0  ;;  %v2497_v60 = vld [vmem:[%s3216_s5 + $0x10] sm:$0xff]   ;;  %v2499_v62 = vld [vmem:[%s3216_s5 + $0x18] sm:$0xff]   ;;  %v2500_v63 = vld [vmem:[%s3216_s5 + $0x60] sm:$0xff]  }
 0x10f   : > { %2325 = vmatmul.mubr.bf16.vlgmr.msra.gmra.mrb[12].mxu0 %v996_v59  ;;  %v985_v2 = vpop.f32.mrb[11].mxu1  ;;  %v1211_v6 = vpack.c.bf16 %v989_v5, %v989_v5  ;;  %v2496_v59 = vld [vmem:[%s3216_s5 + $0x50] sm:$0xff]   ;;  %v2502_v0 = vld [vmem:[%s3216_s5 + $0x20] sm:$0xff]  }
 0x110   : > { %2335 = vmatpush3.bf16.xpose.msra.mxu0 %v1106_v61  ;;  %2336 = vmatprep.mubr.msk.bf16.mxu0 %vm2668_vm1, %v2667_v29  ;;  %v1318_v9 = vpack.c.bf16 %v990_v8, %v990_v8  ;;  %v2498_v61 = vld [vmem:[%s3216_s5 + $0x58] sm:$0xff]  }
 0x111   : > { %2346 = vmatprep.subr.bf16.mxu0 %v2667_v29 }
 0x117   : > { %2337 = vmatmul.mubr.bf16.vlgmr.msra.gmra.mrb[16].mxu0 %v1104_v3 }
 0x118   : > { %2347 = vmatpush3.bf16.xpose.msra.mxu0 %v1213_v4  ;;  %2348 = vmatprep.mubr.msk.bf16.mxu0 %vm2668_vm1, %v2667_v29 }
 0x119   : > { %2358 = vmatprep.subr.bf16.mxu0 %v2667_v29 }
 0x11f   : > { %2349 = vmatmul.mubr.bf16.vlgmr.msra.gmra.mrb[20].mxu0 %v1211_v6 }
 0x120   : > { %2359 = vmatpush3.bf16.xpose.msra.mxu0 %v1320_v7  ;;  %2360 = vmatprep.mubr.msk.bf16.mxu0 %vm2668_vm1, %v2667_v29 }
 0x121   : > { %2270 = vmatprep.subr.bf16.mxu0 %v2492_v53 }
 0x127   : > { %2361 = vmatmul.mubr.bf16.vlgmr.msra.gmra.mrb[24].mxu0 %v1318_v9 }
 0x128   : > { %2271 = vmatpush3.bf16.msra.mxu0 %v2493_v54 }
 0x129   : > { %2272 = vmatprep.subr.bf16.mxu0 %v2494_v56 }
 0x12c   : > { %2273 = vmatpush3.bf16.msra.mxu0 %v2495_v57 }
 0x12d   : > { %2274 = vmatprep.subr.bf16.mxu0 %v2496_v59 }
 0x130   : > { %2275 = vmatpush3.bf16.msra.mxu0 %v2497_v60 }
 0x131   : > { %2276 = vmatprep.subr.bf16.mxu0 %v2498_v61 }
 0x134   : > { %2277 = vmatpush3.bf16.msra.mxu0 %v2499_v62 }
 0x135   : > { %2278 = vmatprep.subr.bf16.mxu0 %v2500_v63 }
 0x138   : > { %2279 = vmatpush3.bf16.msra.mxu0 %v2502_v0 }
 0x1e2   : > { %v1035_v10 = vpop.f32.mrb[12].mxu0 }
 0x1e3   : > { %v2326_v11 = vpop.f32.mrb[13].mxu0  ;;  %v1042_v12 = vsel %vm1041_vm3, %v1035_v10, -inf }
 0x1e4   : > { %1043 = vmax.xlane.f32.xlu0 %v1042_v12  ;;  %v1038_v13 = vpop.f32.mrb[14].mxu0 }
 0x1e5   : > { %v2327_v14 = vpop.f32.mrb[15].mxu0  ;;  %v2501_v13 = vld [vmem:[%s3216_s5 + $0xc0] sm:$0xff]  }
 0x1ea   : > { %v1143_v15 = vpop.f32.mrb[16].mxu0 }
 0x1eb   : > { %v2338_v16 = vpop.f32.mrb[17].mxu0  ;;  %v1149_v17 = vsel %vm1041_vm3, %v1143_v15, -inf }
 0x1ec   : > { %1150 = vmax.xlane.f32.xlu0 %v1149_v17  ;;  %v1146_v18 = vpop.f32.mrb[18].mxu0  ;;  %v2505_v17 = vld [vmem:[%s3216_s5 + $0xc8] sm:$0xff]  }
 0x1ed   : > { %v2339_v19 = vpop.f32.mrb[19].mxu0  ;;  %v2506_v18 = vld [vmem:[%s3216_s5 + $0x28] sm:$0xff]  }
 0x1ee   : > { %v2507_v19 = vld [vmem:[%s3216_s5 + $0x88] sm:$0xff]  }
 0x1f2   : > { %v1250_v20 = vpop.f32.mrb[20].mxu0 }
 0x1f3   : > { %v2350_v21 = vpop.f32.mrb[21].mxu0  ;;  %v1256_v22 = vsel %vm1041_vm3, %v1250_v20, -inf }
 0x1f4   : > { %1257 = vmax.xlane.f32.xlu1 %v1256_v22  ;;  %v1253_v24 = vpop.f32.mrb[22].mxu0  ;;  %v2509_v21 = vld [vmem:[%s3216_s5 + $0xd0] sm:$0xff]  }
 0x1f5   : > { %v2351_v25 = vpop.f32.mrb[23].mxu0  ;;  %v2510_v22 = vld [vmem:[%s3216_s5 + $0x30] sm:$0xff]  }
 0x1f6   : > { %v2511_v24 = vld [vmem:[%s3216_s5 + $0x90] sm:$0xff]   ;;  %v2512_v25 = vld [vmem:[%s3216_s5 + $0x78] sm:$0xff]  }
 0x1fa   : > { %v1357_v26 = vpop.f32.mrb[24].mxu0 }
 0x1fb   : > { %v2362_v27 = vpop.f32.mrb[25].mxu0  ;;  %v1363_v28 = vsel %vm1041_vm3, %v1357_v26, -inf }
 0x1fc   : > { %1364 = vmax.xlane.f32.xlu1 %v1363_v28  ;;  %v1360_v30 = vpop.f32.mrb[26].mxu0  ;;  %v2514_v27 = vld [vmem:[%s3216_s5 + $0x38] sm:$0xff]  }
 0x1fd   : > { %v2363_v31 = vpop.f32.mrb[27].mxu0  ;;  %v2515_v28 = vld [vmem:[%s3216_s5 + $0x98] sm:$0xff]   ;;  %v2516_v30 = vld [vmem:[%s3216_s5 + $0xe0] sm:$0xff]  }
 0x1fe   : > { %v2517_v31 = vld [vmem:[%s3216_s5 + $0xa0] sm:$0xff]  }
 0x271   : > { %v1044_v32 = vpop.xlane.xlu0 %1043 }
 0x272   : > { %v1045_v33 = vsub.f32 %v1035_v10, %v1044_v32  ;;  %v2518_v32 = vld [vmem:[%s3216_s5 + $0xe8] sm:$0xff]  }
 0x274   : > { %v1046_v34 = vmul.f32 1.442695, %v1045_v33  ;;  %v2519_v33 = vld [vmem:[%s3216_s5 + $0xa8] sm:$0xff]  }
 0x276   : > { %2530 = vpow2.f32 %v1046_v34  ;;  %v2520_v34 = vld [vmem:[%s3216_s5 + $0xf0] sm:$0xff]  }
 0x279   : > { %v1151_v35 = vpop.xlane.xlu0 %1150 }
 0x27a   : > { %v1152_v36 = vsub.f32 %v1143_v15, %v1151_v35  ;;  %v2503_v15 = vld [vmem:[%s3216_s5 + $0x80] sm:$0xff]   ;;  %v2521_v35 = vld [vmem:[%s3216_s5 + $0xb0] sm:$0xff]  }
 0x27c   : > { %v1153_v37 = vmul.f32 1.442695, %v1152_v36  ;;  %v2522_v36 = vld [vmem:[%s3216_s5 + $0xf8] sm:$0xff]  }
 0x27e   : > { %2532 = vpow2.f32 %v1153_v37  ;;  %v2523_v37 = vld [vmem:[%s3216_s5 + $0xb8] sm:$0xff]  }
 0x280   : > { %v2531_v38 = vpop.eup %2530 }
 0x281   : > { %v1258_v39 = vpop.xlane.xlu1 %1257  ;;  %v1048_v40 = vsel %vm1041_vm3, %v2531_v38, 0.0 }
 0x282   : > { %v1259_v41 = vsub.f32 %v1250_v20, %v1258_v39  ;;  %1049 = vadd.xlane.f32.xlu0 %v1048_v40  ;;  %v2508_v20 = vld [vmem:[%s3216_s5 + $0x70] sm:$0xff]  }
 0x284   : > { %v1260_v42 = vmul.f32 1.442695, %v1259_v41 }
 0x286   : > { %2534 = vpow2.f32 %v1260_v42 }
 0x288   : > { %v2533_v43 = vpop.eup %2532 }
 0x289   : > { %v1365_v44 = vpop.xlane.xlu1 %1364  ;;  %v1155_v45 = vsel %vm1041_vm3, %v2533_v43, 0.0 }
 0x28a   : > { %v1366_v47 = vsub.f32 %v1357_v26, %v1365_v44  ;;  %1156 = vadd.xlane.f32.xlu1 %v1155_v45  ;;  %v2513_v26 = vld [vmem:[%s3216_s5 + $0xd8] sm:$0xff]  }
 0x28c   : > { %v1367_v48 = vmul.f32 1.442695, %v1366_v47 }
 0x28e   : > { %2536 = vpow2.f32 %v1367_v48 }
 0x290   : > { %v2535_v49 = vpop.eup %2534 }
 0x291   : > { %v1262_v50 = vsel %vm1041_vm3, %v2535_v49, 0.0 }
 0x292   : > { %1263 = vadd.xlane.f32.xlu0 %v1262_v50 }
 0x298   : > { %v2537_v51 = vpop.eup %2536 }
 0x299   : > { %v1369_v52 = vsel %vm1041_vm3, %v2537_v51, 0.0 }
 0x29a   : > { %1370 = vadd.xlane.f32.xlu1 %v1369_v52 }
 0x30f   : > { %v1050_v1 = vpop.xlane.xlu0 %1049 }
 0x310   : > { %2538 = vrcp.f32 %v1050_v1 }
 0x317   : > { %v1157_v2 = vpop.xlane.xlu1 %1156 }
 0x318   : > { %2540 = vrcp.f32 %v1157_v2  ;;  %v2201_v2 = vld [vmem:[%s3217_s6] ss:$0 sm:$0xff] }
 0x31a   : > { %v2539_v3 = vpop.eup %2538 }
 0x31b   : > { %v1052_v4 = vmul.f32 %v2539_v3, %v2531_v38 }
 0x31d   : > { %v1054_v5 = vpack.c.bf16 %v1052_v4, %v1052_v4  ;;  %1053 = vst.msk [vmem:[%s2975_s17] sm:$0xff] %vm1041_vm3, %v1052_v4 }
 0x31f   : > { %2331 = vmatmul.mubr.msk.bf16.vlgmr.msra.gmra.mrb[12].mxu1 %vm1041_vm3, %v1054_v5  ;;  %v1264_v6 = vpop.xlane.xlu0 %1263 }
 0x320   : > { %2341 = vmatpush3.bf16.msra.mxu1 %v2916_v46  ;;  %2542 = vrcp.f32 %v1264_v6  ;;  %2342 = vmatprep.mubr.msk.bf16.mxu1 %vm2668_vm1, %v2667_v29 }
 0x321   : > { %2352 = vmatprep.subr.bf16.mxu1 %v2667_v29 }
 0x322   : > { %v2541_v7 = vpop.eup %2540 }
 0x323   : > { %v1159_v8 = vmul.f32 %v2541_v7, %v2533_v43 }
 0x325   : > { %v1162_v9 = vpack.c.bf16 %v1159_v8, %v1159_v8  ;;  %2195 = vst.msk [vmem:[%s2975_s17 + $0x8] sm:$0xff] %vm1041_vm3, %v1159_v8 }
 0x327   : > { %2343 = vmatmul.mubr.msk.bf16.vlgmr.msra.gmra.mrb[16].mxu1 %vm1041_vm3, %v1162_v9  ;;  %v1371_v10 = vpop.xlane.xlu1 %1370 }
 0x328   : > { %2353 = vmatpush3.bf16.msra.mxu1 %v2920_v55  ;;  %2544 = vrcp.f32 %v1371_v10  ;;  %2354 = vmatprep.mubr.msk.bf16.mxu1 %vm2668_vm1, %v2667_v29 }
 0x329   : > { %2364 = vmatprep.subr.bf16.mxu1 %v2667_v29 }
 0x32a   : > { %v2543_v46 = vpop.eup %2542 }
 0x32b   : > { %v1266_v11 = vmul.f32 %v2543_v46, %v2535_v49 }
 0x32d   : > { %v1269_v12 = vpack.c.bf16 %v1266_v11, %v1266_v11  ;;  %2197 = vst.msk [vmem:[%s2975_s17 + $0x10] sm:$0xff] %vm1041_vm3, %v1266_v11 }
 0x32f   : > { %2355 = vmatmul.mubr.msk.bf16.vlgmr.msra.gmra.mrb[20].mxu1 %vm1041_vm3, %v1269_v12 }
 0x330   : > { %2365 = vmatpush3.bf16.msra.mxu1 %v2923_v58  ;;  %2366 = vmatprep.mubr.msk.bf16.mxu1 %vm2668_vm1, %v2667_v29  ;;  %v2504_v58 = vld [vmem:[%s3216_s5 + $0x68] sm:$0xff]  }
 0x331   : > { %2292 = vmatprep.subr.bf16.mxu1 %v2501_v13  ;;  %2280 = vmatprep.subr.bf16.mxu0 %v2504_v58  ;;  %v2527_v58 = vld [vmem:[%s3222_s11 + $0x8] sm:$0xff]  }
 0x332   : > { %v2545_v55 = vpop.eup %2544  ;;  %2281 = vmatpush3.bf16.msra.mxu0 %v2506_v18 }
 0x333   : > { %v1373_v14 = vmul.f32 %v2545_v55, %v2537_v51  ;;  %2282 = vmatprep.subr.bf16.mxu0 %v2508_v20 }
 0x335   : > { %v1376_v16 = vpack.c.bf16 %v1373_v14, %v1373_v14  ;;  %2199 = vst.msk [vmem:[%s2975_s17 + $0x18] sm:$0xff] %vm1041_vm3, %v1373_v14 }
 0x336   : > { %2283 = vmatpush3.bf16.msra.mxu0 %v2510_v22 }
 0x337   : > { %2367 = vmatmul.mubr.msk.bf16.vlgmr.msra.gmra.mrb[24].mxu1 %vm1041_vm3, %v1376_v16  ;;  %2284 = vmatprep.subr.bf16.mxu0 %v2512_v25  ;;  %v2525_v16 = vld [vmem:[%s3220_s9 + $0x8] sm:$0xff]  }
 0x338   : > { %2293 = vmatpush3.bf16.msra.mxu1 %v2503_v15  ;;  %v2524_v15 = vld [vmem:[%s3220_s9] sm:$0xff]  }
 0x339   : > { %2294 = vmatprep.subr.bf16.mxu1 %v2505_v17 }
 0x33a   : > { %2285 = vmatpush3.bf16.msra.mxu0 %v2514_v27  ;;  %v2234_v27 = vld [vmem:[%s3218_s7] ss:$0 sm:$0xff] }
 0x33b   : > { %2370 = vmatprep.subr.bf16.mxu0 %v2667_v29 }
 0x33c   : > { %2295 = vmatpush3.bf16.msra.mxu1 %v2507_v19 }
 0x33d   : > { %2296 = vmatprep.subr.bf16.mxu1 %v2509_v21 }
 0x340   : > { %2297 = vmatpush3.bf16.msra.mxu1 %v2511_v24 }
 0x341   : > { %2298 = vmatprep.subr.bf16.mxu1 %v2513_v26 }
 0x344   : > { %2299 = vmatpush3.bf16.msra.mxu1 %v2515_v28 }
 0x345   : > { %2300 = vmatprep.subr.bf16.mxu1 %v2516_v30  ;;  %v2235_v30 = vld [vmem:[%s3219_s8] ss:$0 sm:$0xff] }
 0x348   : > { %2301 = vmatpush3.bf16.msra.mxu1 %v2517_v31 }
 0x349   : > { %2302 = vmatprep.subr.bf16.mxu1 %v2518_v32 }
 0x34c   : > { %2303 = vmatpush3.bf16.msra.mxu1 %v2519_v33 }
 0x34d   : > { %2304 = vmatprep.subr.bf16.mxu1 %v2520_v34  ;;  %v2528_v34 = vld [vmem:[%s3222_s11 + $0x10] sm:$0xff]  }
 0x350   : > { %2305 = vmatpush3.bf16.msra.mxu1 %v2521_v35  ;;  %v2529_v35 = vld [vmem:[%s3222_s11 + $0x18] sm:$0xff]  }
 0x351   : > { %2306 = vmatprep.subr.bf16.mxu1 %v2522_v36  ;;  %v2236_v36 = vld [vmem:[%s3221_s10] ss:$0 sm:$0xff] }
 0x354   : > { %2307 = vmatpush3.bf16.msra.mxu1 %v2523_v37 }
 0x355   : > { %2378 = vmatprep.subr.bf16.mxu1 %v2667_v29 }
 0x3f2   : > { %v1096_v38 = vpop.f32.mrb[12].mxu1 }
 0x3f3   : > { %v2332_v39 = vpop.f32.mrb[13].mxu1  ;;  %v1428_v45 = vpack.c.bf16 %v1096_v38, %v1096_v38 }
 0x3f4   : > { %v1099_v40 = vpop.f32.mrb[14].mxu1 }
 0x3f5   : > { %v2333_v41 = vpop.f32.mrb[15].mxu1 }
 0x3fa   : > { %v1203_v42 = vpop.f32.mrb[16].mxu1 }
 0x3fb   : > { %v1429_v43 = vpack.c.bf16 %v1203_v42, %v1203_v42  ;;  %v2344_v44 = vpop.f32.mrb[17].mxu1 }
 0x3fc   : > { %v1206_v47 = vpop.f32.mrb[18].mxu1 }
 0x3fd   : > { %v2345_v48 = vpop.f32.mrb[19].mxu1  ;;  %1727 = vmatprep.mubr.bf16.mxu0 %v1429_v43 }
 0x3fe   : > { %1728 = vmatmul.mubr.bf16.vlgmr.msra.gmra.mrb[28].mxu0 %v1428_v45 }
 0x3ff   : > { %2374 = vmatprep.mubr.msk.bf16.mxu0 %vm2668_vm1, %v2667_v29  ;;  %2371 = vmatpush3.bf16.msra.mxu0 %v2524_v15 }
 0x400   : > { %2372 = vmatprep.subr.bf16.mxu0 %v2667_v29 }
 0x402   : > { %v1310_v49 = vpop.f32.mrb[20].mxu1 }
 0x403   : > { %v2356_v50 = vpop.f32.mrb[21].mxu1  ;;  %v1430_v57 = vpack.c.bf16 %v1310_v49, %v1310_v49  ;;  %2373 = vmatpush3.bf16.msra.mxu0 %v2525_v16 }
 0x404   : > { %v1313_v51 = vpop.f32.mrb[22].mxu1 }
 0x405   : > { %v2357_v52 = vpop.f32.mrb[23].mxu1 }
 0x40a   : > { %v1417_v53 = vpop.f32.mrb[24].mxu1 }
 0x40b   : > { %v1431_v54 = vpack.c.bf16 %v1417_v53, %v1417_v53  ;;  %v2368_v56 = vpop.f32.mrb[25].mxu1 }
 0x40c   : > { %v1420_v59 = vpop.f32.mrb[26].mxu1 }
 0x40d   : > { %v2369_v60 = vpop.f32.mrb[27].mxu1  ;;  %1767 = vmatprep.mubr.bf16.mxu1 %v1431_v54 }
 0x40e   : > { %1768 = vmatmul.mubr.bf16.vlgmr.msra.gmra.mrb[28].mxu1 %v1430_v57 }
 0x40f   : > { %2386 = vmatprep.mubr.msk.bf16.mxu1 %vm2668_vm1, %v2667_v29 }
 0x4d1   : > { %v2286_v61 = vpop.f32.mrb[28].mxu0 }
 0x4d2   : > { %v2287_v62 = vpop.f32.mrb[29].mxu0 }
 0x4d3   : > { %v2288_v63 = vadd.f32 %v2287_v62, %v2286_v61  ;;  %v2289_v0 = vpop.f32.mrb[30].mxu0 }
 0x4d4   : > { %v2290_v1 = vpop.f32.mrb[31].mxu0 }
 0x4d5   : > { %v1730_v5 = vadd.f32 %v2288_v63, %v2201_v2 }
 0x4e1   : > { %v2308_v3 = vpop.f32.mrb[28].mxu1 }
 0x4e2   : > { %v2309_v4 = vpop.f32.mrb[29].mxu1 }
 0x4e3   : > { %v2310_v6 = vadd.f32 %v2309_v4, %v2308_v3  ;;  %v2311_v7 = vpop.f32.mrb[30].mxu1 }
 0x4e4   : > { %v2312_v8 = vpop.f32.mrb[31].mxu1 }
 0x4e5   : > { %v1770_v9 = vadd.f32 %v2310_v6, %v1730_v5 }
 0x4e7   : > { %v1775_v10 = vadd.f32 %v1770_v9, %v2887_v23  ;;  %v2526_v23 = vld [vmem:[%s3222_s11] sm:$0xff]  }
 0x4e8   : > { %2379 = vmatpush3.bf16.msra.mxu1 %v2526_v23 }
 0x4e9   : > { %v1778_v46 = vsel %vm628_vm0, %v1775_v10, 0.0  ;;  %2380 = vmatprep.subr.bf16.mxu1 %v2667_v29 }
 0x4ea   : > { %1779 = vadd.xlane.f32.xlu0 %v1778_v46 }
 0x4ec   : > { %2381 = vmatpush3.bf16.msra.mxu1 %v2527_v58 }
 0x4ed   : > { %2382 = vmatprep.subr.bf16.mxu1 %v2667_v29 }
 0x4f0   : > { %2383 = vmatpush3.bf16.msra.mxu1 %v2528_v34 }
 0x4f1   : > { %2384 = vmatprep.subr.bf16.mxu1 %v2667_v29  ;;  %v2240_v29 = vld [vmem:[%s3223_s12] ss:$0 sm:$0xff] }
 0x4f4   : > { %2385 = vmatpush3.bf16.msra.mxu1 %v2529_v35 }
 0x577   : > { %v1780_v11 = vpop.xlane.xlu0 %1779 }
 0x578   : > { %v1782_v12 = vmul.f32 0.03125, %v1780_v11 }
 0x57a   : > { %v1783_v13 = vsub.f32 %v1775_v10, %v1782_v12 }
 0x57c   : > { %v1784_v55 = vmul.f32 %v1783_v13, %v1783_v13 }
 0x57e   : > { %v1785_v14 = vsel %vm628_vm0, %v1784_v55, 0.0 }
 0x57f   : > { %1786 = vadd.xlane.f32.xlu1 %v1785_v14 }
 0x60c   : > { %v1787_v17 = vpop.xlane.xlu1 %1786 }
 0x60d   : > { %v1788_v18 = vmul.f32 0.032258064, %v1787_v17 }
 0x60f   : > { %2546 = vrsqrt.f32 %v1788_v18  ;;  %vm1791_vm4 = vcmp.eq.f32.partialorder %v1788_v18, inf  ;;  %v1794_v21 = vand.u32 2147483648, %v1788_v18  ;;  %vm1793_vm5 = vcmp.eq.f32.partialorder %v1788_v18, 0.0 }
 0x619   : > { %v2547_v19 = vpop.eup %2546 }
 0x61a   : > { %v1790_v20 = vmul.f32 %v2547_v19, %v1788_v18 }
 0x61c   : > { %v1792_v22 = vsel %vm1791_vm4, %v1788_v18, %v1790_v20 }
 0x61d   : > { %v1795_v24 = vsel %vm1793_vm5, %v1794_v21, %v1792_v22 }
 0x61e   : > { %v1796_v25 = vadd.f32 0.001, %v1795_v24 }
 0x620   : > { %2548 = vrcp.f32 %v1796_v25 }
 0x62a   : > { %v2549_v26 = vpop.eup %2548 }
 0x62b   : > { %v1798_v28 = vmul.f32 %v2549_v26, %v1783_v13 }
 0x62d   : > { %v1805_v31 = vmul.f32 %v2234_v27, %v1798_v28 }
 0x62f   : > { %v1812_v32 = vadd.f32 %v2235_v30, %v1805_v31 }
 0x631   : > { %v1813_v33 = vpack.c.bf16 %v1812_v32, %v1812_v32 }
 0x633   : > { %2375 = vmatmul.mubr.msk.bf16.vlgmr.msra.gmra.mrb[32].mxu0 %vm628_vm0, %v1813_v33 }
 0x706   : > { %v1874_v37 = vpop.f32.mrb[32].mxu0 }
 0x707   : > { %v1875_v38 = vadd.f32 %v2236_v36, %v1874_v37  ;;  %v2376_v39 = vpop.f32.mrb[33].mxu0 }
 0x708   : > { %v1877_v40 = vpop.f32.mrb[34].mxu0 }
 0x709   : > { %v1880_v41 = vmax.f32 %v1875_v38, 0.0  ;;  %v2377_v42 = vpop.f32.mrb[35].mxu0 }
 0x70b   : > { %v1881_v43 = vpack.c.bf16 %v1880_v41, %v1880_v41 }
 0x70d   : > { %2387 = vmatmul.mubr.msk.bf16.vlgmr.msra.gmra.mrb[32].mxu1 %vm1921_vm6, %v1881_v43 }
 0x7e0   : > { %v1959_v44 = vpop.f32.mrb[32].mxu1 }
 0x7e1   : > { %v1960_v45 = vadd.f32 %v2240_v29, %v1959_v44  ;;  %v2388_v47 = vpop.f32.mrb[33].mxu1 }
 0x7e2   : > { %v1962_v48 = vpop.f32.mrb[34].mxu1 }
 0x7e3   : > { %v2389_v49 = vpop.f32.mrb[35].mxu1  ;;  %v1965_v50 = vadd.f32 %v1960_v45, %v1812_v32 }
 0x7e5   : > { %v1968_v51 = vsel %vm628_vm0, %v1965_v50, 0.0 }
 0x7e6   : > { %1969 = vadd.xlane.f32.xlu0 %v1968_v51 }
 0x873   : > { %v1970_v52 = vpop.xlane.xlu0 %1969 }
 0x874   : > { %v1971_v53 = vmul.f32 0.03125, %v1970_v52 }
 0x876   : > { %v1972_v54 = vsub.f32 %v1965_v50, %v1971_v53 }
 0x878   : > { %v1973_v56 = vmul.f32 %v1972_v54, %v1972_v54 }
 0x87a   : > { %v1974_v57 = vsel %vm628_vm0, %v1973_v56, 0.0 }
 0x87b   : > { %1975 = vadd.xlane.f32.xlu1 %v1974_v57 }
 0x87c   : > { %2567 = shalt.err (!%p2564_p5)
}
 0x87d   : > { %s2568_s17 = scalar_lea.hbm %s3121_s20, 512  ;;  %s2572_s25 = scalar_lea.hbm %s3227_s16, 1024 }
 0x87e   : > { %p2569_p6 = scmp.ne.s32.totalorder %s3121_s20, %s2568_s17  ;;  %p2573_p10 = scmp.lt.u32.totalorder %s3121_s20, %s3227_s16 }
 0x87f   : > { %p2574_p11 = scmp.lt.u32.totalorder %s2572_s25, %s2568_s17  ;;  %p2576_p13 = scmp.lt.u32.totalorder %s2568_s17, %s3121_s20 }
 0x880   : > { %p2570_p7 = pnand %p2569_p6, %p2799_p4 }
 0x881   : > { %p2575_p12 = por %p2574_p11, %p2573_p10 }
 0x882   : > { %p2571_p9 = pneg %p2570_p7 }
 0x883   : > { %p2577_p0 = por %p2576_p13, %p2575_p12 }
 0x885   : > { %p2578_p1 = pnand %p2577_p0, %p2571_p9 }
 0x887   : > { %2581 = shalt.err (!%p2578_p1)
}
 0x888   : > { %s2670_s21 = smov 128   ;;  %s2671_s15 = smov 256   ;;  %v2246_v4 = vld [vmem:[%s3224_s13] ss:$0 sm:$0xff] }
 0x889   : > { %s2672_s30 = smov 8   ;;  %s2160_s17 = sshll.u32 %s2972_s26, 3  ;;  %v2247_v6 = vld [vmem:[%s3225_s14] ss:$0 sm:$0xff] }
 0x88a   : > { %2391 = dma.vmem_to_hbm [thread:$0]  (%p2799_p4), %s3124_s27, 512, %s3121_s20, %s2009_s23, %s2670_s21, %s2671_s15, %s2672_s30  }
 0x88b   : > { %s553_s27 = scalar_lea.vmem [#allocation6], %s2160_s17  ;;  %s3251_s25 = sshll.u32 %s2656_s24, 7 }
 0x88c   : > { %s2023_s23 = sshll.u32 %s553_s27, 4  ;;  %s3252_s21 = sld [smem:[#allocation21_spill]]  ;;  %s3164_s23 = int_to_ptr.vmem [resolvable:$true] %s2023_s23 }
 0x88d   : > { %s2004_s29 = scalar_lea.sflag [#allocation7], %s2972_s26  ;;  %s2582_s28 = scalar_lea.vmem %s3164_s23, 128 }
 0x88e   : > { %p2583_p2 = scmp.ne.s32.totalorder %s3164_s23, %s2582_s28  ;;  %s2673_s17 = smov [#allocation6]  }
 0x88f   : > { %s2586_s24 = sshll.u32 %s2673_s17, 4  ;;  %s2587_s24 = int_to_ptr.vmem [resolvable:$false] %s2586_s24 }
 0x890   : > { %p2584_p3 = pnand %p2583_p2, %p2799_p4  ;;  %s2588_s30 = scalar_lea.vmem %s2587_s24, 256 }
 0x891   : > { %p2589_p6 = scmp.lt.s32.totalorder %s3164_s23, %s2587_s24  ;;  %p2590_p7 = scmp.lt.s32.totalorder %s2588_s30, %s2582_s28 }
 0x892   : > { %s3253_s15 = smov %s3252_s21  ;;  %s3162_s1 = scalar_lea.hbm %s3252_s21, %s3251_s25 }
 0x893   : > { %p2585_p5 = pneg %p2584_p3  ;;  %p2591_p9 = por %p2590_p7, %p2589_p6 }
 0x895   : > { %p2592_p10 = pnand %p2591_p9, %p2585_p5 }
 0x908   : > { %v1976_v59 = vpop.xlane.xlu1 %1975 }
 0x909   : > { %v1977_v60 = vmul.f32 0.032258064, %v1976_v59 }
 0x90b   : > { %2550 = vrsqrt.f32 %v1977_v60  ;;  %vm1980_vm7 = vcmp.eq.f32.partialorder %v1977_v60, inf  ;;  %v1983_v63 = vand.u32 2147483648, %v1977_v60  ;;  %vm1982_vm8 = vcmp.eq.f32.partialorder %v1977_v60, 0.0 }
 0x915   : > { %v2551_v61 = vpop.eup %2550 }
 0x916   : > { %v1979_v62 = vmul.f32 %v2551_v61, %v1977_v60 }
 0x918   : > { %v1981_v0 = vsel %vm1980_vm7, %v1977_v60, %v1979_v62 }
 0x919   : > { %v1984_v1 = vsel %vm1982_vm8, %v1983_v63, %v1981_v0 }
 0x91a   : > { %v1985_v2 = vadd.f32 0.001, %v1984_v1 }
 0x91c   : > { %2552 = vrcp.f32 %v1985_v2 }
 0x926   : > { %v2553_v3 = vpop.eup %2552 }
 0x927   : > { %v1987_v5 = vmul.f32 %v2553_v3, %v1972_v54 }
 0x929   : > { %v1994_v7 = vmul.f32 %v2246_v4, %v1987_v5 }
 0x92b   : > { %v2001_v8 = vadd.f32 %v2247_v6, %v1994_v7 }
 0x92d   : > { %2002 = vst.msk [vmem:[%s553_s27] sm:$0xff] %vm628_vm0, %v2001_v8 }
 0x92e   : > { %2595 = shalt.err (!%p2592_p10)
}
 0x92f   : > { %s2596_s26 = scalar_lea.hbm %s3162_s1, 128  ;;  %s2600_s25 = scalar_lea.hbm %s3253_s15, 256 }
 0x930   : > { %p2597_p11 = scmp.ne.s32.totalorder %s3162_s1, %s2596_s26  ;;  %p2601_p0 = scmp.lt.u32.totalorder %s3162_s1, %s3253_s15 }
 0x931   : > { %p2602_p1 = scmp.lt.u32.totalorder %s2600_s25, %s2596_s26  ;;  %p2604_p3 = scmp.lt.u32.totalorder %s2596_s26, %s3162_s1 }
 0x932   : > { %p2598_p12 = pnand %p2597_p11, %p2799_p4 }
 0x933   : > { %p2603_p2 = por %p2602_p1, %p2601_p0 }
 0x934   : > { %p2599_p13 = pneg %p2598_p12 }
 0x935   : > { %p2605_p5 = por %p2604_p3, %p2603_p2 }
 0x937   : > { %p2606_p6 = pnand %p2605_p5, %p2599_p13 }
 0x939   : > { %2609 = shalt.err (!%p2606_p6)
}
 0x93a   : > { %2390 = dma.vmem_to_hbm [thread:$0]  (%p2799_p4), %s3164_s23, 128, %s3162_s1, %s2004_s29  }
 0x93b PF: > { %s3254_s21 = sld [smem:[#allocation15_spill]]  ;;  %s3255_s28 = sld [smem:[#allocation12_spill]] }
 0x941   : > { %p2401_p7 = scmp.ge.s32.totalorder %s3254_s21, 2  ;;  %s2051_s24 = sand.u32 1, %s3255_s28  }
 0x942   : > { %s2052_s30 = scalar_lea.sflag [#allocation7], %s2051_s24 }
 0x943   : > { %p2395_p9 = pnand %p2401_p7, %p2806_p8 }
 0x945   : > { %2635 = dma.done.wait (!%p2395_p9), %s2052_s30, 128  }
 0x946   : > { %2637 = vsyncadd (!%p2395_p9), %s2052_s30, 4294967168  ;;  %s2061_s26 = scalar_lea.sflag [#allocation9], %s2051_s24 }
 0x947   : > { %2639 = dma.done.wait (!%p2395_p9), %s2061_s26, 512  }
 0x948   : > { %2641 = vsyncadd (!%p2395_p9), %s2061_s26, 4294966784  ;;  %s33_s26 = sadd.s32 1, %s3254_s21   ;;  %s3257_s0 = sld [smem:[#allocation13_spill]] }
 0x949   : > { %p30_p10 = scmp.ge.s32.totalorder %s33_s26, 4   ;;  %s3258_s23 = sld [smem:[#allocation18_spill]] }
 0x94a   : > { %s3259_s24 = sld [smem:[#allocation14_spill]]  ;;  %s3260_s25 = sld [smem:[#allocation16_spill]] }
 0x94b   : > { %s3261_s21 = smov %s2648_s22  ;;  %32 = sbr.rel (!%p30_p10) target bundleno = 10 (0xa), region = 142 }
 0x94e   : > { %s3262_s22 = smov %s3257_s0 }
 0x952   :  { %2066 = vsyncpa [#allocation7], 1 }
 0x953   :  { %2068 = vsyncpa [#allocation7 + $0x1], 1 }
 0x954   :  { %2069 = vsyncpa [#allocation9], 1 }
 0x955   :  { %2071 = vsyncpa [#allocation9 + $0x1], 1 }

</bundles_post_ra>
